<compile_context>
chip_gen: v7x
topology: tpu7x:2x2x1
jax: 0.10.0
libtpu: 0.0.40
codegen_flags: <defaults>
</compile_context>

<pallas_src>
import numpy as np
import jax
import jax.numpy as jnp
from jax.experimental import pallas as pl
from jax.experimental.pallas import tpu as pltpu

_BIG = 1e30            # baked into padded norm columns so pads lose every min
_D2_BUDGET = 4 << 20   # f32 bytes allowed for the per-step distance tile


def _round_up(x, m):
    return ((x + m - 1) // m) * m


# ----------------------------- Pallas kernel --------------------------------
def _chamfer_kernel(sizes_ref, a_ref, bt_ref, out_ref, rowmin_ref, acc_ref):
    """Grid = (pair-steps, m-blocks). One step processes PP pairs.

    a_ref  : (PP, N_max, K)  rows [-2p, 1, ||p||^2] (padded rows: [0, 0, _BIG])
    bt_ref : (PP, K, M_blk)  cols [ q , ||q||^2, 1]^T (padded cols: [0, _BIG, 0])
    d2[p,i,j] = a[p,i].b[p,:,j] = ||p_i - q_j||^2  (pads come out as _BIG;
    padded-row x padded-col comes out 0, handled by the reduced-vector masks)
    rowmin_ref : (PP, N_max, 1) running min over m-blocks        (term 1)
    acc_ref    : (PP, 1, 1)     running masked col-min sums      (term 2)
    out_ref    : (PP, 8, 128)   per-pair scalar loss, lane-dense broadcast
    """
    step = pl.program_id(0)
    mb = pl.program_id(1)
    last_mb = pl.num_programs(1) - 1
    pp, n_max, _ = a_ref.shape
    m_blk = bt_ref.shape[2]

    @pl.when(mb == 0)
    def _init():
        rowmin_ref[...] = jnp.full(rowmin_ref.shape, _BIG, rowmin_ref.dtype)
        acc_ref[...] = jnp.zeros(acc_ref.shape, acc_ref.dtype)

    # batched MXU matmul: (PP, N_max, K) x (PP, K, M_blk) -> (PP, N_max, M_blk)
    d2 = jax.lax.dot_general(a_ref[...], bt_ref[...],
                             dimension_numbers=(((2,), (1,)), ((0,), (0,))),
                             preferred_element_type=jnp.float32)
    d2 = jnp.maximum(d2, 0.0)          # clamp f32 cancellation negatives

    # term 1: online row-min across m-blocks (no full-tile masking needed)
    rowmin_ref[...] = jnp.minimum(rowmin_ref[...],
                                  jnp.min(d2, axis=2, keepdims=True))

    # term 2: this block's per-column min over rows, masked to valid columns
    col_min = jnp.min(d2, axis=1, keepdims=True)               # (PP, 1, M_blk)
    col_id = jax.lax.broadcasted_iota(jnp.int32, (1, m_blk), 1) + mb * m_blk
    for p in range(pp):                                         # pp <= 8, unrolled
        m_p = sizes_ref[2 * (step * pp + p) + 1]
        cm = col_min[p]                                         # (1, M_blk)
        acc_ref[p] = acc_ref[p] + jnp.sum(jnp.where(col_id < m_p, cm, 0.0),
                                          keepdims=True)

    @pl.when(mb == last_mb)
    def _fin():
        row_id = jax.lax.broadcasted_iota(jnp.int32, (n_max, 1), 0)
        for p in range(pp):
            n_p = sizes_ref[2 * (step * pp + p)]
            rm = rowmin_ref[p]                                  # (N_max, 1)
            total_p = acc_ref[p] + jnp.sum(jnp.where(row_id < n_p, rm, 0.0),
                                           keepdims=True)       # (1, 1)
            # lane-dense, unmasked (8, 128) store of the per-pair scalar loss
            out_ref[p] = jnp.broadcast_to(total_p, (8, 128))


# ------------------------- fused pallas_call wrapper -------------------------
def _chamfer_pairs_loss(pairs):
    """pairs: list of (cloud1 (n,D), cloud2 (m,D), coefficient).

    Returns sum_p coeff_p * chamfer(cloud1_p, cloud2_p) with ONE pallas_call.
    """
    if not pairs:
        return jnp.float32(0.0)

    num_pairs = len(pairs)
    d = int(pairs[0][0].shape[1])
    k_aug = _round_up(d + 2, 8)                            # augmented coord dim

    n_np = np.asarray([int(c1.shape[0]) for c1, _, _ in pairs], np.int32)
    m_np = np.asarray([int(c2.shape[0]) for _, c2, _ in pairs], np.int32)
    coef_np = np.asarray([float(c) for _, _, c in pairs], np.float32)
    assert (n_np > 0).all() and (m_np > 0).all(), "empty point clouds unsupported"

    n_raw, m_raw = int(n_np.max()), int(m_np.max())
    n_max = _round_up(max(n_raw, 8), 128 if n_raw >= 128 else 8)

    # M blocking: single block for small clouds, 128-multiple blocks otherwise
    m_small = _round_up(max(m_raw, 8), 128 if m_raw >= 128 else 8)
    if n_max * m_small * 4 <= _D2_BUDGET:
        m_blk = m_max = m_small
    else:
        m_blk = max(128, min(1024, (_D2_BUDGET // (n_max * 4)) // 128 * 128))
        m_max = _round_up(m_raw, m_blk)
    num_m_blocks = m_max // m_blk

    # pairs per grid step: amortize ~0.35 us/step for small clouds
    pp = int(max(1, min(num_pairs, 8, _D2_BUDGET // (n_max * m_blk * 4))))
    num_steps = (num_pairs + pp - 1) // pp
    p_pad = num_steps * pp

    # ---- batched preprocessing (one pad per cloud, then batched augmentation) ----
    c1_pads, c2_pads = [], []
    for c1, c2, _ in pairs:
        c1 = jnp.asarray(c1, jnp.float32)
        c2 = jnp.asarray(c2, jnp.float32)
        c1_pads.append(jnp.pad(c1, ((0, n_max - c1.shape[0]), (0, 0))))
        c2_pads.append(jnp.pad(c2, ((0, m_max - c2.shape[0]), (0, 0))))
    P1 = jnp.stack(c1_pads)                                # (P, N_max, D)
    P2 = jnp.stack(c2_pads)                                # (P, M_max, D)

    # static (host-built) validity masks
    rv = jnp.asarray((np.arange(n_max)[None, :] < n_np[:, None])[..., None])
    cv = jnp.asarray((np.arange(m_max)[None, :] < m_np[:, None])[..., None])

    nrm1 = jnp.sum(P1 * P1, axis=-1, keepdims=True)        # (P, N_max, 1)
    nrm2 = jnp.sum(P2 * P2, axis=-1, keepdims=True)        # (P, M_max, 1)
    # augmented rows so that A @ B^T == pairwise squared distances, with the
    # padding mask folded into the norm/ones columns (valid x pad -> _BIG).
    A = jnp.concatenate([-2.0 * P1, rv.astype(jnp.float32),
                         jnp.where(rv, nrm1, _BIG)], axis=-1)       # (P, N_max, D+2)
    B = jnp.concatenate([P2, jnp.where(cv, nrm2, _BIG),
                         cv.astype(jnp.float32)], axis=-1)          # (P, M_max, D+2)
    pad_k = k_aug - (d + 2)
    A = jnp.pad(A, ((0, p_pad - num_pairs), (0, 0), (0, pad_k)))    # (P_pad, N_max, K)
    B = jnp.pad(B, ((0, p_pad - num_pairs), (0, 0), (0, pad_k)))
    BT = jnp.swapaxes(B, 1, 2)                                      # (P_pad, K, M_max)

    # flat 1-D SMEM sizes (avoids the 2-D SMEM padding blowup)
    sizes_flat = np.zeros(2 * p_pad, np.int32)
    sizes_flat[0:2 * num_pairs:2] = n_np
    sizes_flat[1:2 * num_pairs:2] = m_np

    # explicit VMEM budget (double-buffered blocks + d2 tile + scratch + headroom)
    d2_b = pp * n_max * m_blk * 4
    a_b = pp * n_max * k_aug * 4
    bt_b = pp * k_aug * m_blk * 4
    out_b = pp * 8 * 128 * 4
    rowmin_b = pp * n_max * 128 * 4      # lane-padded scratch
    need = 2 * (a_b + bt_b + out_b) + 2 * d2_b + rowmin_b + (4 << 20)
    vmem_limit = int(min(64 << 20, max(16 << 20, need)))

    out = pl.pallas_call(
        _chamfer_kernel,
        out_shape=jax.ShapeDtypeStruct((p_pad, 8, 128), jnp.float32),
        grid_spec=pltpu.PrefetchScalarGridSpec(
            num_scalar_prefetch=1,
            grid=(num_steps, num_m_blocks),
            in_specs=[
                pl.BlockSpec((pp, n_max, k_aug), lambda s, mb, sz: (s, 0, 0)),
                pl.BlockSpec((pp, k_aug, m_blk), lambda s, mb, sz: (s, 0, mb)),
            ],
            out_specs=pl.BlockSpec((pp, 8, 128), lambda s, mb, sz: (s, 0, 0)),
            scratch_shapes=[
                pltpu.VMEM((pp, n_max, 1), jnp.float32),   # running row-min
                pltpu.VMEM((pp, 1, 1), jnp.float32),       # running col-min sums
            ],
        ),
        compiler_params=pltpu.CompilerParams(
            dimension_semantics=("parallel", "arbitrary"),
            vmem_limit_bytes=vmem_limit),
    )(jnp.asarray(sizes_flat), A, BT)

    per_pair = out[:num_pairs, 0, 0]                       # (P,)
    return jnp.dot(jnp.asarray(coef_np), per_pair)


def chamfer_dist_pallas(cloud1, cloud2):
    """ChamferDistLoss.chamfer_dist_tensor for a single pair of clouds."""
    return _chamfer_pairs_loss([(cloud1, cloud2, 1.0)])


# --------------------------- module-level glue -------------------------------
def _collect_batch_pairs(pts_in, sizes_in, pts_out, sizes_out, coefficient):
    """ChamferDistLoss.forward(input, output, batch_in, batch_out) -> pair list.

    Batch ids are contiguous & sorted (PyG-style), encoded by static per-batch
    sizes so the boolean-mask gathers become static slices.  Keeps the original
    quirk: nb_batch = max(batch_in), loop range(nb_batch) (last batch skipped).
    """
    assert len(sizes_in) == len(sizes_out)        # max(batch_in) == max(batch_out)
    nb_batch = len(sizes_in) - 1                  # == max(batch_in)
    off_in = np.concatenate([[0], np.cumsum(sizes_in)]).astype(int)
    off_out = np.concatenate([[0], np.cumsum(sizes_out)]).astype(int)
    pairs = []
    for b in range(nb_batch):
        pairs.append((pts_in[off_in[b]:off_in[b + 1]],
                      pts_out[off_out[b]:off_out[b + 1]],
                      coefficient))
    return pairs


def layer_chamfer_dist_loss(coefficients, points_list, points_list_out,
                            sizes_list, sizes_list_out):
    """LayerChamferDistLoss.forward ([-i] indexing kept verbatim)."""
    length = len(coefficients)
    assert length == len(points_list) == len(sizes_list)
    assert length == len(points_list_out) == len(sizes_list_out)
    pairs = []
    for i in range(length):
        pairs += _collect_batch_pairs(points_list[i], sizes_list[i],
                                      points_list_out[-i], sizes_list_out[-i],
                                      float(coefficients[i]))
    # every (layer, batch) pair -> one slot of a single fused pallas_call
    return _chamfer_pairs_loss(pairs)


# ----------------------------- numpy reference -------------------------------
def _chamfer_ref(c1, c2):
    d = ((c1[:, None, :] - c2[None, :, :]) ** 2).sum(-1)
    idx1 = d.argmin(axis=1)
    loss = ((c1 - c2[idx1]) ** 2).sum()
    idx2 = d.argmin(axis=0)
    loss += ((c2 - c1[idx2]) ** 2).sum()
    return loss


def _ref_forward(coeffs, pls, plos, bls, blos):
    total = 0.0
    for i in range(len(coeffs)):
        inp, out = pls[i], plos[-i]
        bi, bo = bls[i], blos[-i]
        assert int(bi.max()) == int(bo.max())
        nb_batch = int(bi.max())
        l = 0.0
        for b in range(nb_batch):            # same off-by-one quirk as PyTorch code
            l += _chamfer_ref(inp[bi == b], out[bo == b])
        total += coeffs[i] * l
    return total


# ---------------------------------- main -------------------------------------
if __name__ == "__main__":
    key = jax.random.PRNGKey(0)
    # deterministic "parameters" of LayerChamferDistLoss.__init__
    coefficients = [0.5, 1.0, 0.25]

    D = 3
    # per-layer, per-graph point counts (3 graphs -> batch ids 0, 1, 2)
    sizes_in = [(16, 12, 8), (12, 16, 8), (8, 8, 16)]
    sizes_out = [(8, 12, 16), (16, 8, 12), (12, 16, 8)]

    points_list, points_list_out = [], []
    batch_list, batch_list_out = [], []
    for i in range(len(coefficients)):
        key, k1, k2 = jax.random.split(key, 3)
        n_in, n_out = int(np.sum(sizes_in[i])), int(np.sum(sizes_out[i]))
        points_list.append(jax.random.normal(k1, (n_in, D), jnp.float32))
        points_list_out.append(jax.random.normal(k2, (n_out, D), jnp.float32))
        batch_list.append(np.repeat(np.arange(len(sizes_in[i])), sizes_in[i]))
        batch_list_out.append(np.repeat(np.arange(len(sizes_out[i])), sizes_out[i]))

    loss = layer_chamfer_dist_loss(coefficients, points_list, points_list_out,
                                   sizes_in, sizes_out)
    loss = jax.block_until_ready(loss)

    ref = _ref_forward(coefficients,
                       [np.asarray(p) for p in points_list],
                       [np.asarray(p) for p in points_list_out],
                       batch_list, batch_list_out)
    np.testing.assert_allclose(float(loss), float(ref), rtol=1e-4, atol=1e-4)
    print("KERNEL_OK")
</pallas_src>

<mosaic_0001>
module attributes {stable_mosaic.version = 11 : i64} {
  func.func @_chamfer_kernel(%arg0: i32, %arg1: i32, %arg2: memref<12xi32, #tpu.memory_space<smem>>, %arg3: memref<6x16x8xf32, #tpu.memory_space<vmem>>, %arg4: memref<6x8x16xf32, #tpu.memory_space<vmem>>, %arg5: memref<6x8x128xf32, #tpu.memory_space<vmem>>, %arg6: memref<6x16x1xf32, #tpu.memory_space<vmem>>, %arg7: memref<6x1x1xf32, #tpu.memory_space<vmem>>) attributes {dimension_semantics = [#tpu.dimension_semantics<parallel>, #tpu.dimension_semantics<arbitrary>], iteration_bounds = array<i64: 1, 1>, scalar_prefetch = 1 : i64, scratch_operands = 2 : i64, tpu.core_type = #tpu.core_type<tc>, window_params = [{transform_indices = @transform_0, window_bounds = array<i64: 6, 16, 8>}, {transform_indices = @transform_1, window_bounds = array<i64: 6, 8, 16>}, {transform_indices = @transform_2, window_bounds = array<i64: 6, 8, 128>}]} {
    %c0_i32 = arith.constant 0 : i32
    %0 = arith.cmpi eq, %arg1, %c0_i32 : i32
    %1 = arith.extui %0 : i1 to i32
    %c0_i32_0 = arith.constant 0 : i32
    %2 = arith.cmpi ne, %1, %c0_i32_0 : i32
    scf.if %2 {
      %cst_78 = arith.constant 1.000000e+30 : f32
      %160 = vector.broadcast %cst_78 : f32 to vector<6x16x1xf32>
      %c0_79 = arith.constant 0 : index
      %c0_80 = arith.constant 0 : index
      %c0_81 = arith.constant 0 : index
      %161 = vector.load %arg6[%c0_79, %c0_80, %c0_81] : memref<6x16x1xf32, #tpu.memory_space<vmem>>, vector<6x16x1xf32>
      tpu.vector_store %arg6[%c0_79, %c0_80, %c0_81], %160 {strides = array<i32>} : memref<6x16x1xf32, #tpu.memory_space<vmem>>, vector<6x16x1xf32>,
      %cst_82 = arith.constant 0.000000e+00 : f32
      %162 = vector.broadcast %cst_82 : f32 to vector<6x1x1xf32>
      %c0_83 = arith.constant 0 : index
      %c0_84 = arith.constant 0 : index
      %c0_85 = arith.constant 0 : index
      %163 = vector.load %arg7[%c0_83, %c0_84, %c0_85] : memref<6x1x1xf32, #tpu.memory_space<vmem>>, vector<6x1x1xf32>
      tpu.vector_store %arg7[%c0_83, %c0_84, %c0_85], %162 {strides = array<i32>} : memref<6x1x1xf32, #tpu.memory_space<vmem>>, vector<6x1x1xf32>,
    } else {
    }
    %c0 = arith.constant 0 : index
    %c0_1 = arith.constant 0 : index
    %c0_2 = arith.constant 0 : index
    %3 = vector.load %arg3[%c0, %c0_1, %c0_2] : memref<6x16x8xf32, #tpu.memory_space<vmem>>, vector<6x16x8xf32>
    %c0_3 = arith.constant 0 : index
    %c0_4 = arith.constant 0 : index
    %c0_5 = arith.constant 0 : index
    %4 = vector.load %arg4[%c0_3, %c0_4, %c0_5] : memref<6x8x16xf32, #tpu.memory_space<vmem>>, vector<6x8x16xf32>
    %cst = arith.constant dense<0.000000e+00> : vector<6x16x16xf32>
    %5 = tpu.matmul %3, %4, %cst {dimension_numbers = #tpu.dot_dimension_numbers<[2], [1], [1], [2], [0, 0, 0, 1, 1, 2], [0], [0]>} : vector<6x16x8xf32>, vector<6x8x16xf32>, vector<6x16x16xf32> -> vector<6x16x16xf32>
    %cst_6 = arith.constant 0.000000e+00 : f32
    %6 = vector.broadcast %cst_6 : f32 to vector<6x16x16xf32>
    %7 = arith.maximumf %5, %6 : vector<6x16x16xf32>
    %c0_7 = arith.constant 0 : index
    %c0_8 = arith.constant 0 : index
    %c0_9 = arith.constant 0 : index
    %8 = vector.load %arg6[%c0_7, %c0_8, %c0_9] : memref<6x16x1xf32, #tpu.memory_space<vmem>>, vector<6x16x1xf32>
    %cst_10 = arith.constant dense<0x7F800000> : vector<6x16xf32>
    %9 = vector.multi_reduction <minimumf>, %7, %cst_10 [2] : vector<6x16x16xf32> to vector<6x16xf32>
    %10 = vector.shape_cast %9 : vector<6x16xf32> to vector<6x16x1xf32>
    %11 = arith.minimumf %8, %10 : vector<6x16x1xf32>
    %c0_11 = arith.constant 0 : index
    %c0_12 = arith.constant 0 : index
    %c0_13 = arith.constant 0 : index
    %12 = vector.load %arg6[%c0_11, %c0_12, %c0_13] : memref<6x16x1xf32, #tpu.memory_space<vmem>>, vector<6x16x1xf32>
    tpu.vector_store %arg6[%c0_11, %c0_12, %c0_13], %11 {strides = array<i32>} : memref<6x16x1xf32, #tpu.memory_space<vmem>>, vector<6x16x1xf32>,
    %cst_14 = arith.constant dense<0x7F800000> : vector<6x16xf32>
    %13 = vector.multi_reduction <minimumf>, %7, %cst_14 [1] : vector<6x16x16xf32> to vector<6x16xf32>
    %14 = vector.shape_cast %13 : vector<6x16xf32> to vector<6x1x16xf32>
    %15 = tpu.iota {dimensions = array<i32: 1>} : vector<1x16xi32>
    %c16_i32 = arith.constant 16 : i32
    %16 = arith.muli %arg1, %c16_i32 : i32
    %17 = vector.broadcast %16 : i32 to vector<1x16xi32>
    %18 = arith.addi %15, %17 : vector<1x16xi32>
    %c6_i32 = arith.constant 6 : i32
    %19 = arith.muli %arg0, %c6_i32 : i32
    %c0_i32_15 = arith.constant 0 : i32
    %20 = arith.addi %19, %c0_i32_15 : i32
    %c2_i32 = arith.constant 2 : i32
    %21 = arith.muli %c2_i32, %20 : i32
    %c1_i32 = arith.constant 1 : i32
    %22 = arith.addi %21, %c1_i32 : i32
    %23 = arith.index_cast %22 : i32 to index
    %24 = memref.load %arg2[%23] : memref<12xi32, #tpu.memory_space<smem>>
    %25 = vector.extract_strided_slice %14 {offsets = [0, 0, 0], sizes = [1, 1, 16], strides = [1, 1, 1]} : vector<6x1x16xf32> to vector<1x1x16xf32>
    %26 = vector.shape_cast %25 : vector<1x1x16xf32> to vector<1x16xf32>
    %c0_16 = arith.constant 0 : index
    %c0_17 = arith.constant 0 : index
    %c0_18 = arith.constant 0 : index
    %27 = vector.load %arg7[%c0_16, %c0_17, %c0_18] : memref<6x1x1xf32, #tpu.memory_space<vmem>>, vector<1x1x1xf32>
    %28 = vector.shape_cast %27 : vector<1x1x1xf32> to vector<1x1xf32>
    %29 = vector.broadcast %24 : i32 to vector<1x16xi32>
    %30 = arith.cmpi slt, %18, %29 : vector<1x16xi32>
    %cst_19 = arith.constant 0.000000e+00 : f32
    %31 = vector.broadcast %cst_19 : f32 to vector<1x16xf32>
    %32 = arith.select %30, %26, %31 : vector<1x16xi1>, vector<1x16xf32>
    %33 = vector.shape_cast %32 : vector<1x16xf32> to vector<1x1x16xf32>
    %cst_20 = arith.constant dense<0.000000e+00> : vector<1xf32>
    %34 = vector.multi_reduction <add>, %33, %cst_20 [1, 2] : vector<1x1x16xf32> to vector<1xf32>
    %35 = vector.shape_cast %34 : vector<1xf32> to vector<1x1x1xf32>
    %36 = vector.extract %35[0, 0, 0] : f32 from vector<1x1x1xf32>
    %37 = vector.broadcast %36 : f32 to vector<1x1xf32>
    %38 = arith.addf %28, %37 : vector<1x1xf32>
    %c0_21 = arith.constant 0 : index
    %c0_22 = arith.constant 0 : index
    %c0_23 = arith.constant 0 : index
    %39 = vector.load %arg7[%c0_21, %c0_22, %c0_23] : memref<6x1x1xf32, #tpu.memory_space<vmem>>, vector<1x1x1xf32>
    %40 = vector.shape_cast %39 : vector<1x1x1xf32> to vector<1x1xf32>
    %41 = vector.shape_cast %38 : vector<1x1xf32> to vector<1x1x1xf32>
    tpu.vector_store %arg7[%c0_21, %c0_22, %c0_23], %41 {strides = array<i32>} : memref<6x1x1xf32, #tpu.memory_space<vmem>>, vector<1x1x1xf32>,
    %c6_i32_24 = arith.constant 6 : i32
    %42 = arith.muli %arg0, %c6_i32_24 : i32
    %c1_i32_25 = arith.constant 1 : i32
    %43 = arith.addi %42, %c1_i32_25 : i32
    %c2_i32_26 = arith.constant 2 : i32
    %44 = arith.muli %c2_i32_26, %43 : i32
    %c1_i32_27 = arith.constant 1 : i32
    %45 = arith.addi %44, %c1_i32_27 : i32
    %46 = arith.index_cast %45 : i32 to index
    %47 = memref.load %arg2[%46] : memref<12xi32, #tpu.memory_space<smem>>
    %48 = vector.extract_strided_slice %14 {offsets = [1, 0, 0], sizes = [1, 1, 16], strides = [1, 1, 1]} : vector<6x1x16xf32> to vector<1x1x16xf32>
    %49 = vector.shape_cast %48 : vector<1x1x16xf32> to vector<1x16xf32>
    %c1 = arith.constant 1 : index
    %c0_28 = arith.constant 0 : index
    %c0_29 = arith.constant 0 : index
    %50 = vector.load %arg7[%c1, %c0_28, %c0_29] : memref<6x1x1xf32, #tpu.memory_space<vmem>>, vector<1x1x1xf32>
    %51 = vector.shape_cast %50 : vector<1x1x1xf32> to vector<1x1xf32>
    %52 = vector.broadcast %47 : i32 to vector<1x16xi32>
    %53 = arith.cmpi slt, %18, %52 : vector<1x16xi32>
    %cst_30 = arith.constant 0.000000e+00 : f32
    %54 = vector.broadcast %cst_30 : f32 to vector<1x16xf32>
    %55 = arith.select %53, %49, %54 : vector<1x16xi1>, vector<1x16xf32>
    %56 = vector.shape_cast %55 : vector<1x16xf32> to vector<1x1x16xf32>
    %cst_31 = arith.constant dense<0.000000e+00> : vector<1xf32>
    %57 = vector.multi_reduction <add>, %56, %cst_31 [1, 2] : vector<1x1x16xf32> to vector<1xf32>
    %58 = vector.shape_cast %57 : vector<1xf32> to vector<1x1x1xf32>
    %59 = vector.extract %58[0, 0, 0] : f32 from vector<1x1x1xf32>
    %60 = vector.broadcast %59 : f32 to vector<1x1xf32>
    %61 = arith.addf %51, %60 : vector<1x1xf32>
    %c1_32 = arith.constant 1 : index
    %c0_33 = arith.constant 0 : index
    %c0_34 = arith.constant 0 : index
    %62 = vector.load %arg7[%c1_32, %c0_33, %c0_34] : memref<6x1x1xf32, #tpu.memory_space<vmem>>, vector<1x1x1xf32>
    %63 = vector.shape_cast %62 : vector<1x1x1xf32> to vector<1x1xf32>
    %64 = vector.shape_cast %61 : vector<1x1xf32> to vector<1x1x1xf32>
    tpu.vector_store %arg7[%c1_32, %c0_33, %c0_34], %64 {strides = array<i32>} : memref<6x1x1xf32, #tpu.memory_space<vmem>>, vector<1x1x1xf32>,
    %c6_i32_35 = arith.constant 6 : i32
    %65 = arith.muli %arg0, %c6_i32_35 : i32
    %c2_i32_36 = arith.constant 2 : i32
    %66 = arith.addi %65, %c2_i32_36 : i32
    %c2_i32_37 = arith.constant 2 : i32
    %67 = arith.muli %c2_i32_37, %66 : i32
    %c1_i32_38 = arith.constant 1 : i32
    %68 = arith.addi %67, %c1_i32_38 : i32
    %69 = arith.index_cast %68 : i32 to index
    %70 = memref.load %arg2[%69] : memref<12xi32, #tpu.memory_space<smem>>
    %71 = vector.extract_strided_slice %14 {offsets = [2, 0, 0], sizes = [1, 1, 16], strides = [1, 1, 1]} : vector<6x1x16xf32> to vector<1x1x16xf32>
    %72 = vector.shape_cast %71 : vector<1x1x16xf32> to vector<1x16xf32>
    %c2 = arith.constant 2 : index
    %c0_39 = arith.constant 0 : index
    %c0_40 = arith.constant 0 : index
    %73 = vector.load %arg7[%c2, %c0_39, %c0_40] : memref<6x1x1xf32, #tpu.memory_space<vmem>>, vector<1x1x1xf32>
    %74 = vector.shape_cast %73 : vector<1x1x1xf32> to vector<1x1xf32>
    %75 = vector.broadcast %70 : i32 to vector<1x16xi32>
    %76 = arith.cmpi slt, %18, %75 : vector<1x16xi32>
    %cst_41 = arith.constant 0.000000e+00 : f32
    %77 = vector.broadcast %cst_41 : f32 to vector<1x16xf32>
    %78 = arith.select %76, %72, %77 : vector<1x16xi1>, vector<1x16xf32>
    %79 = vector.shape_cast %78 : vector<1x16xf32> to vector<1x1x16xf32>
    %cst_42 = arith.constant dense<0.000000e+00> : vector<1xf32>
    %80 = vector.multi_reduction <add>, %79, %cst_42 [1, 2] : vector<1x1x16xf32> to vector<1xf32>
    %81 = vector.shape_cast %80 : vector<1xf32> to vector<1x1x1xf32>
    %82 = vector.extract %81[0, 0, 0] : f32 from vector<1x1x1xf32>
    %83 = vector.broadcast %82 : f32 to vector<1x1xf32>
    %84 = arith.addf %74, %83 : vector<1x1xf32>
    %c2_43 = arith.constant 2 : index
    %c0_44 = arith.constant 0 : index
    %c0_45 = arith.constant 0 : index
    %85 = vector.load %arg7[%c2_43, %c0_44, %c0_45] : memref<6x1x1xf32, #tpu.memory_space<vmem>>, vector<1x1x1xf32>
    %86 = vector.shape_cast %85 : vector<1x1x1xf32> to vector<1x1xf32>
    %87 = vector.shape_cast %84 : vector<1x1xf32> to vector<1x1x1xf32>
    tpu.vector_store %arg7[%c2_43, %c0_44, %c0_45], %87 {strides = array<i32>} : memref<6x1x1xf32, #tpu.memory_space<vmem>>, vector<1x1x1xf32>,
    %c6_i32_46 = arith.constant 6 : i32
    %88 = arith.muli %arg0, %c6_i32_46 : i32
    %c3_i32 = arith.constant 3 : i32
    %89 = arith.addi %88, %c3_i32 : i32
    %c2_i32_47 = arith.constant 2 : i32
    %90 = arith.muli %c2_i32_47, %89 : i32
    %c1_i32_48 = arith.constant 1 : i32
    %91 = arith.addi %90, %c1_i32_48 : i32
    %92 = arith.index_cast %91 : i32 to index
    %93 = memref.load %arg2[%92] : memref<12xi32, #tpu.memory_space<smem>>
    %94 = vector.extract_strided_slice %14 {offsets = [3, 0, 0], sizes = [1, 1, 16], strides = [1, 1, 1]} : vector<6x1x16xf32> to vector<1x1x16xf32>
    %95 = vector.shape_cast %94 : vector<1x1x16xf32> to vector<1x16xf32>
    %c3 = arith.constant 3 : index
    %c0_49 = arith.constant 0 : index
    %c0_50 = arith.constant 0 : index
    %96 = vector.load %arg7[%c3, %c0_49, %c0_50] : memref<6x1x1xf32, #tpu.memory_space<vmem>>, vector<1x1x1xf32>
    %97 = vector.shape_cast %96 : vector<1x1x1xf32> to vector<1x1xf32>
    %98 = vector.broadcast %93 : i32 to vector<1x16xi32>
    %99 = arith.cmpi slt, %18, %98 : vector<1x16xi32>
    %cst_51 = arith.constant 0.000000e+00 : f32
    %100 = vector.broadcast %cst_51 : f32 to vector<1x16xf32>
    %101 = arith.select %99, %95, %100 : vector<1x16xi1>, vector<1x16xf32>
    %102 = vector.shape_cast %101 : vector<1x16xf32> to vector<1x1x16xf32>
    %cst_52 = arith.constant dense<0.000000e+00> : vector<1xf32>
    %103 = vector.multi_reduction <add>, %102, %cst_52 [1, 2] : vector<1x1x16xf32> to vector<1xf32>
    %104 = vector.shape_cast %103 : vector<1xf32> to vector<1x1x1xf32>
    %105 = vector.extract %104[0, 0, 0] : f32 from vector<1x1x1xf32>
    %106 = vector.broadcast %105 : f32 to vector<1x1xf32>
    %107 = arith.addf %97, %106 : vector<1x1xf32>
    %c3_53 = arith.constant 3 : index
    %c0_54 = arith.constant 0 : index
    %c0_55 = arith.constant 0 : index
    %108 = vector.load %arg7[%c3_53, %c0_54, %c0_55] : memref<6x1x1xf32, #tpu.memory_space<vmem>>, vector<1x1x1xf32>
    %109 = vector.shape_cast %108 : vector<1x1x1xf32> to vector<1x1xf32>
    %110 = vector.shape_cast %107 : vector<1x1xf32> to vector<1x1x1xf32>
    tpu.vector_store %arg7[%c3_53, %c0_54, %c0_55], %110 {strides = array<i32>} : memref<6x1x1xf32, #tpu.memory_space<vmem>>, vector<1x1x1xf32>,
    %c6_i32_56 = arith.constant 6 : i32
    %111 = arith.muli %arg0, %c6_i32_56 : i32
    %c4_i32 = arith.constant 4 : i32
    %112 = arith.addi %111, %c4_i32 : i32
    %c2_i32_57 = arith.constant 2 : i32
    %113 = arith.muli %c2_i32_57, %112 : i32
    %c1_i32_58 = arith.constant 1 : i32
    %114 = arith.addi %113, %c1_i32_58 : i32
    %115 = arith.index_cast %114 : i32 to index
    %116 = memref.load %arg2[%115] : memref<12xi32, #tpu.memory_space<smem>>
    %117 = vector.extract_strided_slice %14 {offsets = [4, 0, 0], sizes = [1, 1, 16], strides = [1, 1, 1]} : vector<6x1x16xf32> to vector<1x1x16xf32>
    %118 = vector.shape_cast %117 : vector<1x1x16xf32> to vector<1x16xf32>
    %c4 = arith.constant 4 : index
    %c0_59 = arith.constant 0 : index
    %c0_60 = arith.constant 0 : index
    %119 = vector.load %arg7[%c4, %c0_59, %c0_60] : memref<6x1x1xf32, #tpu.memory_space<vmem>>, vector<1x1x1xf32>
    %120 = vector.shape_cast %119 : vector<1x1x1xf32> to vector<1x1xf32>
    %121 = vector.broadcast %116 : i32 to vector<1x16xi32>
    %122 = arith.cmpi slt, %18, %121 : vector<1x16xi32>
    %cst_61 = arith.constant 0.000000e+00 : f32
    %123 = vector.broadcast %cst_61 : f32 to vector<1x16xf32>
    %124 = arith.select %122, %118, %123 : vector<1x16xi1>, vector<1x16xf32>
    %125 = vector.shape_cast %124 : vector<1x16xf32> to vector<1x1x16xf32>
    %cst_62 = arith.constant dense<0.000000e+00> : vector<1xf32>
    %126 = vector.multi_reduction <add>, %125, %cst_62 [1, 2] : vector<1x1x16xf32> to vector<1xf32>
    %127 = vector.shape_cast %126 : vector<1xf32> to vector<1x1x1xf32>
    %128 = vector.extract %127[0, 0, 0] : f32 from vector<1x1x1xf32>
    %129 = vector.broadcast %128 : f32 to vector<1x1xf32>
    %130 = arith.addf %120, %129 : vector<1x1xf32>
    %c4_63 = arith.constant 4 : index
    %c0_64 = arith.constant 0 : index
    %c0_65 = arith.constant 0 : index
    %131 = vector.load %arg7[%c4_63, %c0_64, %c0_65] : memref<6x1x1xf32, #tpu.memory_space<vmem>>, vector<1x1x1xf32>
    %132 = vector.shape_cast %131 : vector<1x1x1xf32> to vector<1x1xf32>
    %133 = vector.shape_cast %130 : vector<1x1xf32> to vector<1x1x1xf32>
    tpu.vector_store %arg7[%c4_63, %c0_64, %c0_65], %133 {strides = array<i32>} : memref<6x1x1xf32, #tpu.memory_space<vmem>>, vector<1x1x1xf32>,
    %c6_i32_66 = arith.constant 6 : i32
    %134 = arith.muli %arg0, %c6_i32_66 : i32
    %c5_i32 = arith.constant 5 : i32
    %135 = arith.addi %134, %c5_i32 : i32
    %c2_i32_67 = arith.constant 2 : i32
    %136 = arith.muli %c2_i32_67, %135 : i32
    %c1_i32_68 = arith.constant 1 : i32
    %137 = arith.addi %136, %c1_i32_68 : i32
    %138 = arith.index_cast %137 : i32 to index
    %139 = memref.load %arg2[%138] : memref<12xi32, #tpu.memory_space<smem>>
    %140 = vector.extract_strided_slice %14 {offsets = [5, 0, 0], sizes = [1, 1, 16], strides = [1, 1, 1]} : vector<6x1x16xf32> to vector<1x1x16xf32>
    %141 = vector.shape_cast %140 : vector<1x1x16xf32> to vector<1x16xf32>
    %c5 = arith.constant 5 : index
    %c0_69 = arith.constant 0 : index
    %c0_70 = arith.constant 0 : index
    %142 = vector.load %arg7[%c5, %c0_69, %c0_70] : memref<6x1x1xf32, #tpu.memory_space<vmem>>, vector<1x1x1xf32>
    %143 = vector.shape_cast %142 : vector<1x1x1xf32> to vector<1x1xf32>
    %144 = vector.broadcast %139 : i32 to vector<1x16xi32>
    %145 = arith.cmpi slt, %18, %144 : vector<1x16xi32>
    %cst_71 = arith.constant 0.000000e+00 : f32
    %146 = vector.broadcast %cst_71 : f32 to vector<1x16xf32>
    %147 = arith.select %145, %141, %146 : vector<1x16xi1>, vector<1x16xf32>
    %148 = vector.shape_cast %147 : vector<1x16xf32> to vector<1x1x16xf32>
    %cst_72 = arith.constant dense<0.000000e+00> : vector<1xf32>
    %149 = vector.multi_reduction <add>, %148, %cst_72 [1, 2] : vector<1x1x16xf32> to vector<1xf32>
    %150 = vector.shape_cast %149 : vector<1xf32> to vector<1x1x1xf32>
    %151 = vector.extract %150[0, 0, 0] : f32 from vector<1x1x1xf32>
    %152 = vector.broadcast %151 : f32 to vector<1x1xf32>
    %153 = arith.addf %143, %152 : vector<1x1xf32>
    %c5_73 = arith.constant 5 : index
    %c0_74 = arith.constant 0 : index
    %c0_75 = arith.constant 0 : index
    %154 = vector.load %arg7[%c5_73, %c0_74, %c0_75] : memref<6x1x1xf32, #tpu.memory_space<vmem>>, vector<1x1x1xf32>
    %155 = vector.shape_cast %154 : vector<1x1x1xf32> to vector<1x1xf32>
    %156 = vector.shape_cast %153 : vector<1x1xf32> to vector<1x1x1xf32>
    tpu.vector_store %arg7[%c5_73, %c0_74, %c0_75], %156 {strides = array<i32>} : memref<6x1x1xf32, #tpu.memory_space<vmem>>, vector<1x1x1xf32>,
    %c0_i32_76 = arith.constant 0 : i32
    %157 = arith.cmpi eq, %arg1, %c0_i32_76 : i32
    %158 = arith.extui %157 : i1 to i32
    %c0_i32_77 = arith.constant 0 : i32
    %159 = arith.cmpi ne, %158, %c0_i32_77 : i32
    scf.if %159 {
      %160 = tpu.iota {dimensions = array<i32: 0>} : vector<16x1xi32>
      %c6_i32_78 = arith.constant 6 : i32
      %161 = arith.muli %arg0, %c6_i32_78 : i32
      %c0_i32_79 = arith.constant 0 : i32
      %162 = arith.addi %161, %c0_i32_79 : i32
      %c2_i32_80 = arith.constant 2 : i32
      %163 = arith.muli %c2_i32_80, %162 : i32
      %164 = arith.index_cast %163 : i32 to index
      %165 = memref.load %arg2[%164] : memref<12xi32, #tpu.memory_space<smem>>
      %c0_81 = arith.constant 0 : index
      %c0_82 = arith.constant 0 : index
      %c0_83 = arith.constant 0 : index
      %166 = vector.load %arg6[%c0_81, %c0_82, %c0_83] : memref<6x16x1xf32, #tpu.memory_space<vmem>>, vector<1x16x1xf32>
      %167 = vector.shape_cast %166 : vector<1x16x1xf32> to vector<16x1xf32>
      %c0_84 = arith.constant 0 : index
      %c0_85 = arith.constant 0 : index
      %c0_86 = arith.constant 0 : index
      %168 = vector.load %arg7[%c0_84, %c0_85, %c0_86] : memref<6x1x1xf32, #tpu.memory_space<vmem>>, vector<1x1x1xf32>
      %169 = vector.shape_cast %168 : vector<1x1x1xf32> to vector<1x1xf32>
      %170 = vector.broadcast %165 : i32 to vector<16x1xi32>
      %171 = arith.cmpi slt, %160, %170 : vector<16x1xi32>
      %cst_87 = arith.constant 0.000000e+00 : f32
      %172 = vector.broadcast %cst_87 : f32 to vector<16x1xf32>
      %173 = arith.select %171, %167, %172 : vector<16x1xi1>, vector<16x1xf32>
      %174 = vector.shape_cast %173 : vector<16x1xf32> to vector<1x16x1xf32>
      %cst_88 = arith.constant dense<0.000000e+00> : vector<1xf32>
      %175 = vector.multi_reduction <add>, %174, %cst_88 [1, 2] : vector<1x16x1xf32> to vector<1xf32>
      %176 = vector.shape_cast %175 : vector<1xf32> to vector<1x1x1xf32>
      %177 = vector.extract %176[0, 0, 0] : f32 from vector<1x1x1xf32>
      %178 = vector.broadcast %177 : f32 to vector<1x1xf32>
      %179 = arith.addf %169, %178 : vector<1x1xf32>
      %180 = vector.shape_cast %179 : vector<1x1xf32> to vector<1x1xf32>
      %181 = vector.broadcast %180 : vector<1x1xf32> to vector<8x128xf32>
      %c0_89 = arith.constant 0 : index
      %c0_90 = arith.constant 0 : index
      %c0_91 = arith.constant 0 : index
      %182 = vector.load %arg5[%c0_89, %c0_90, %c0_91] : memref<6x8x128xf32, #tpu.memory_space<vmem>>, vector<1x8x128xf32>
      %183 = vector.shape_cast %182 : vector<1x8x128xf32> to vector<8x128xf32>
      %184 = vector.shape_cast %181 : vector<8x128xf32> to vector<1x8x128xf32>
      tpu.vector_store %arg5[%c0_89, %c0_90, %c0_91], %184 {strides = array<i32>} : memref<6x8x128xf32, #tpu.memory_space<vmem>>, vector<1x8x128xf32>,
      %c6_i32_92 = arith.constant 6 : i32
      %185 = arith.muli %arg0, %c6_i32_92 : i32
      %c1_i32_93 = arith.constant 1 : i32
      %186 = arith.addi %185, %c1_i32_93 : i32
      %c2_i32_94 = arith.constant 2 : i32
      %187 = arith.muli %c2_i32_94, %186 : i32
      %188 = arith.index_cast %187 : i32 to index
      %189 = memref.load %arg2[%188] : memref<12xi32, #tpu.memory_space<smem>>
      %c1_95 = arith.constant 1 : index
      %c0_96 = arith.constant 0 : index
      %c0_97 = arith.constant 0 : index
      %190 = vector.load %arg6[%c1_95, %c0_96, %c0_97] : memref<6x16x1xf32, #tpu.memory_space<vmem>>, vector<1x16x1xf32>
      %191 = vector.shape_cast %190 : vector<1x16x1xf32> to vector<16x1xf32>
      %c1_98 = arith.constant 1 : index
      %c0_99 = arith.constant 0 : index
      %c0_100 = arith.constant 0 : index
      %192 = vector.load %arg7[%c1_98, %c0_99, %c0_100] : memref<6x1x1xf32, #tpu.memory_space<vmem>>, vector<1x1x1xf32>
      %193 = vector.shape_cast %192 : vector<1x1x1xf32> to vector<1x1xf32>
      %194 = vector.broadcast %189 : i32 to vector<16x1xi32>
      %195 = arith.cmpi slt, %160, %194 : vector<16x1xi32>
      %cst_101 = arith.constant 0.000000e+00 : f32
      %196 = vector.broadcast %cst_101 : f32 to vector<16x1xf32>
      %197 = arith.select %195, %191, %196 : vector<16x1xi1>, vector<16x1xf32>
      %198 = vector.shape_cast %197 : vector<16x1xf32> to vector<1x16x1xf32>
      %cst_102 = arith.constant dense<0.000000e+00> : vector<1xf32>
      %199 = vector.multi_reduction <add>, %198, %cst_102 [1, 2] : vector<1x16x1xf32> to vector<1xf32>
      %200 = vector.shape_cast %199 : vector<1xf32> to vector<1x1x1xf32>
      %201 = vector.extract %200[0, 0, 0] : f32 from vector<1x1x1xf32>
      %202 = vector.broadcast %201 : f32 to vector<1x1xf32>
      %203 = arith.addf %193, %202 : vector<1x1xf32>
      %204 = vector.shape_cast %203 : vector<1x1xf32> to vector<1x1xf32>
      %205 = vector.broadcast %204 : vector<1x1xf32> to vector<8x128xf32>
      %c1_103 = arith.constant 1 : index
      %c0_104 = arith.constant 0 : index
      %c0_105 = arith.constant 0 : index
      %206 = vector.load %arg5[%c1_103, %c0_104, %c0_105] : memref<6x8x128xf32, #tpu.memory_space<vmem>>, vector<1x8x128xf32>
      %207 = vector.shape_cast %206 : vector<1x8x128xf32> to vector<8x128xf32>
      %208 = vector.shape_cast %205 : vector<8x128xf32> to vector<1x8x128xf32>
      tpu.vector_store %arg5[%c1_103, %c0_104, %c0_105], %208 {strides = array<i32>} : memref<6x8x128xf32, #tpu.memory_space<vmem>>, vector<1x8x128xf32>,
      %c6_i32_106 = arith.constant 6 : i32
      %209 = arith.muli %arg0, %c6_i32_106 : i32
      %c2_i32_107 = arith.constant 2 : i32
      %210 = arith.addi %209, %c2_i32_107 : i32
      %c2_i32_108 = arith.constant 2 : i32
      %211 = arith.muli %c2_i32_108, %210 : i32
      %212 = arith.index_cast %211 : i32 to index
      %213 = memref.load %arg2[%212] : memref<12xi32, #tpu.memory_space<smem>>
      %c2_109 = arith.constant 2 : index
      %c0_110 = arith.constant 0 : index
      %c0_111 = arith.constant 0 : index
      %214 = vector.load %arg6[%c2_109, %c0_110, %c0_111] : memref<6x16x1xf32, #tpu.memory_space<vmem>>, vector<1x16x1xf32>
      %215 = vector.shape_cast %214 : vector<1x16x1xf32> to vector<16x1xf32>
      %c2_112 = arith.constant 2 : index
      %c0_113 = arith.constant 0 : index
      %c0_114 = arith.constant 0 : index
      %216 = vector.load %arg7[%c2_112, %c0_113, %c0_114] : memref<6x1x1xf32, #tpu.memory_space<vmem>>, vector<1x1x1xf32>
      %217 = vector.shape_cast %216 : vector<1x1x1xf32> to vector<1x1xf32>
      %218 = vector.broadcast %213 : i32 to vector<16x1xi32>
      %219 = arith.cmpi slt, %160, %218 : vector<16x1xi32>
      %cst_115 = arith.constant 0.000000e+00 : f32
      %220 = vector.broadcast %cst_115 : f32 to vector<16x1xf32>
      %221 = arith.select %219, %215, %220 : vector<16x1xi1>, vector<16x1xf32>
      %222 = vector.shape_cast %221 : vector<16x1xf32> to vector<1x16x1xf32>
      %cst_116 = arith.constant dense<0.000000e+00> : vector<1xf32>
      %223 = vector.multi_reduction <add>, %222, %cst_116 [1, 2] : vector<1x16x1xf32> to vector<1xf32>
      %224 = vector.shape_cast %223 : vector<1xf32> to vector<1x1x1xf32>
      %225 = vector.extract %224[0, 0, 0] : f32 from vector<1x1x1xf32>
      %226 = vector.broadcast %225 : f32 to vector<1x1xf32>
      %227 = arith.addf %217, %226 : vector<1x1xf32>
      %228 = vector.shape_cast %227 : vector<1x1xf32> to vector<1x1xf32>
      %229 = vector.broadcast %228 : vector<1x1xf32> to vector<8x128xf32>
      %c2_117 = arith.constant 2 : index
      %c0_118 = arith.constant 0 : index
      %c0_119 = arith.constant 0 : index
      %230 = vector.load %arg5[%c2_117, %c0_118, %c0_119] : memref<6x8x128xf32, #tpu.memory_space<vmem>>, vector<1x8x128xf32>
      %231 = vector.shape_cast %230 : vector<1x8x128xf32> to vector<8x128xf32>
      %232 = vector.shape_cast %229 : vector<8x128xf32> to vector<1x8x128xf32>
      tpu.vector_store %arg5[%c2_117, %c0_118, %c0_119], %232 {strides = array<i32>} : memref<6x8x128xf32, #tpu.memory_space<vmem>>, vector<1x8x128xf32>,
      %c6_i32_120 = arith.constant 6 : i32
      %233 = arith.muli %arg0, %c6_i32_120 : i32
      %c3_i32_121 = arith.constant 3 : i32
      %234 = arith.addi %233, %c3_i32_121 : i32
      %c2_i32_122 = arith.constant 2 : i32
      %235 = arith.muli %c2_i32_122, %234 : i32
      %236 = arith.index_cast %235 : i32 to index
      %237 = memref.load %arg2[%236] : memref<12xi32, #tpu.memory_space<smem>>
      %c3_123 = arith.constant 3 : index
      %c0_124 = arith.constant 0 : index
      %c0_125 = arith.constant 0 : index
      %238 = vector.load %arg6[%c3_123, %c0_124, %c0_125] : memref<6x16x1xf32, #tpu.memory_space<vmem>>, vector<1x16x1xf32>
      %239 = vector.shape_cast %238 : vector<1x16x1xf32> to vector<16x1xf32>
      %c3_126 = arith.constant 3 : index
      %c0_127 = arith.constant 0 : index
      %c0_128 = arith.constant 0 : index
      %240 = vector.load %arg7[%c3_126, %c0_127, %c0_128] : memref<6x1x1xf32, #tpu.memory_space<vmem>>, vector<1x1x1xf32>
      %241 = vector.shape_cast %240 : vector<1x1x1xf32> to vector<1x1xf32>
      %242 = vector.broadcast %237 : i32 to vector<16x1xi32>
      %243 = arith.cmpi slt, %160, %242 : vector<16x1xi32>
      %cst_129 = arith.constant 0.000000e+00 : f32
      %244 = vector.broadcast %cst_129 : f32 to vector<16x1xf32>
      %245 = arith.select %243, %239, %244 : vector<16x1xi1>, vector<16x1xf32>
      %246 = vector.shape_cast %245 : vector<16x1xf32> to vector<1x16x1xf32>
      %cst_130 = arith.constant dense<0.000000e+00> : vector<1xf32>
      %247 = vector.multi_reduction <add>, %246, %cst_130 [1, 2] : vector<1x16x1xf32> to vector<1xf32>
      %248 = vector.shape_cast %247 : vector<1xf32> to vector<1x1x1xf32>
      %249 = vector.extract %248[0, 0, 0] : f32 from vector<1x1x1xf32>
      %250 = vector.broadcast %249 : f32 to vector<1x1xf32>
      %251 = arith.addf %241, %250 : vector<1x1xf32>
      %252 = vector.shape_cast %251 : vector<1x1xf32> to vector<1x1xf32>
      %253 = vector.broadcast %252 : vector<1x1xf32> to vector<8x128xf32>
      %c3_131 = arith.constant 3 : index
      %c0_132 = arith.constant 0 : index
      %c0_133 = arith.constant 0 : index
      %254 = vector.load %arg5[%c3_131, %c0_132, %c0_133] : memref<6x8x128xf32, #tpu.memory_space<vmem>>, vector<1x8x128xf32>
      %255 = vector.shape_cast %254 : vector<1x8x128xf32> to vector<8x128xf32>
      %256 = vector.shape_cast %253 : vector<8x128xf32> to vector<1x8x128xf32>
      tpu.vector_store %arg5[%c3_131, %c0_132, %c0_133], %256 {strides = array<i32>} : memref<6x8x128xf32, #tpu.memory_space<vmem>>, vector<1x8x128xf32>,
      %c6_i32_134 = arith.constant 6 : i32
      %257 = arith.muli %arg0, %c6_i32_134 : i32
      %c4_i32_135 = arith.constant 4 : i32
      %258 = arith.addi %257, %c4_i32_135 : i32
      %c2_i32_136 = arith.constant 2 : i32
      %259 = arith.muli %c2_i32_136, %258 : i32
      %260 = arith.index_cast %259 : i32 to index
      %261 = memref.load %arg2[%260] : memref<12xi32, #tpu.memory_space<smem>>
      %c4_137 = arith.constant 4 : index
      %c0_138 = arith.constant 0 : index
      %c0_139 = arith.constant 0 : index
      %262 = vector.load %arg6[%c4_137, %c0_138, %c0_139] : memref<6x16x1xf32, #tpu.memory_space<vmem>>, vector<1x16x1xf32>
      %263 = vector.shape_cast %262 : vector<1x16x1xf32> to vector<16x1xf32>
      %c4_140 = arith.constant 4 : index
      %c0_141 = arith.constant 0 : index
      %c0_142 = arith.constant 0 : index
      %264 = vector.load %arg7[%c4_140, %c0_141, %c0_142] : memref<6x1x1xf32, #tpu.memory_space<vmem>>, vector<1x1x1xf32>
      %265 = vector.shape_cast %264 : vector<1x1x1xf32> to vector<1x1xf32>
      %266 = vector.broadcast %261 : i32 to vector<16x1xi32>
      %267 = arith.cmpi slt, %160, %266 : vector<16x1xi32>
      %cst_143 = arith.constant 0.000000e+00 : f32
      %268 = vector.broadcast %cst_143 : f32 to vector<16x1xf32>
      %269 = arith.select %267, %263, %268 : vector<16x1xi1>, vector<16x1xf32>
      %270 = vector.shape_cast %269 : vector<16x1xf32> to vector<1x16x1xf32>
      %cst_144 = arith.constant dense<0.000000e+00> : vector<1xf32>
      %271 = vector.multi_reduction <add>, %270, %cst_144 [1, 2] : vector<1x16x1xf32> to vector<1xf32>
      %272 = vector.shape_cast %271 : vector<1xf32> to vector<1x1x1xf32>
      %273 = vector.extract %272[0, 0, 0] : f32 from vector<1x1x1xf32>
      %274 = vector.broadcast %273 : f32 to vector<1x1xf32>
      %275 = arith.addf %265, %274 : vector<1x1xf32>
      %276 = vector.shape_cast %275 : vector<1x1xf32> to vector<1x1xf32>
      %277 = vector.broadcast %276 : vector<1x1xf32> to vector<8x128xf32>
      %c4_145 = arith.constant 4 : index
      %c0_146 = arith.constant 0 : index
      %c0_147 = arith.constant 0 : index
      %278 = vector.load %arg5[%c4_145, %c0_146, %c0_147] : memref<6x8x128xf32, #tpu.memory_space<vmem>>, vector<1x8x128xf32>
      %279 = vector.shape_cast %278 : vector<1x8x128xf32> to vector<8x128xf32>
      %280 = vector.shape_cast %277 : vector<8x128xf32> to vector<1x8x128xf32>
      tpu.vector_store %arg5[%c4_145, %c0_146, %c0_147], %280 {strides = array<i32>} : memref<6x8x128xf32, #tpu.memory_space<vmem>>, vector<1x8x128xf32>,
      %c6_i32_148 = arith.constant 6 : i32
      %281 = arith.muli %arg0, %c6_i32_148 : i32
      %c5_i32_149 = arith.constant 5 : i32
      %282 = arith.addi %281, %c5_i32_149 : i32
      %c2_i32_150 = arith.constant 2 : i32
      %283 = arith.muli %c2_i32_150, %282 : i32
      %284 = arith.index_cast %283 : i32 to index
      %285 = memref.load %arg2[%284] : memref<12xi32, #tpu.memory_space<smem>>
      %c5_151 = arith.constant 5 : index
      %c0_152 = arith.constant 0 : index
      %c0_153 = arith.constant 0 : index
      %286 = vector.load %arg6[%c5_151, %c0_152, %c0_153] : memref<6x16x1xf32, #tpu.memory_space<vmem>>, vector<1x16x1xf32>
      %287 = vector.shape_cast %286 : vector<1x16x1xf32> to vector<16x1xf32>
      %c5_154 = arith.constant 5 : index
      %c0_155 = arith.constant 0 : index
      %c0_156 = arith.constant 0 : index
      %288 = vector.load %arg7[%c5_154, %c0_155, %c0_156] : memref<6x1x1xf32, #tpu.memory_space<vmem>>, vector<1x1x1xf32>
      %289 = vector.shape_cast %288 : vector<1x1x1xf32> to vector<1x1xf32>
      %290 = vector.broadcast %285 : i32 to vector<16x1xi32>
      %291 = arith.cmpi slt, %160, %290 : vector<16x1xi32>
      %cst_157 = arith.constant 0.000000e+00 : f32
      %292 = vector.broadcast %cst_157 : f32 to vector<16x1xf32>
      %293 = arith.select %291, %287, %292 : vector<16x1xi1>, vector<16x1xf32>
      %294 = vector.shape_cast %293 : vector<16x1xf32> to vector<1x16x1xf32>
      %cst_158 = arith.constant dense<0.000000e+00> : vector<1xf32>
      %295 = vector.multi_reduction <add>, %294, %cst_158 [1, 2] : vector<1x16x1xf32> to vector<1xf32>
      %296 = vector.shape_cast %295 : vector<1xf32> to vector<1x1x1xf32>
      %297 = vector.extract %296[0, 0, 0] : f32 from vector<1x1x1xf32>
      %298 = vector.broadcast %297 : f32 to vector<1x1xf32>
      %299 = arith.addf %289, %298 : vector<1x1xf32>
      %300 = vector.shape_cast %299 : vector<1x1xf32> to vector<1x1xf32>
      %301 = vector.broadcast %300 : vector<1x1xf32> to vector<8x128xf32>
      %c5_159 = arith.constant 5 : index
      %c0_160 = arith.constant 0 : index
      %c0_161 = arith.constant 0 : index
      %302 = vector.load %arg5[%c5_159, %c0_160, %c0_161] : memref<6x8x128xf32, #tpu.memory_space<vmem>>, vector<1x8x128xf32>
      %303 = vector.shape_cast %302 : vector<1x8x128xf32> to vector<8x128xf32>
      %304 = vector.shape_cast %301 : vector<8x128xf32> to vector<1x8x128xf32>
      tpu.vector_store %arg5[%c5_159, %c0_160, %c0_161], %304 {strides = array<i32>} : memref<6x8x128xf32, #tpu.memory_space<vmem>>, vector<1x8x128xf32>,
    } else {
    }
    return
  }
  func.func @transform_0(%arg0: i32, %arg1: i32, %arg2: memref<12xi32, #tpu.memory_space<smem>>) -> (i32, i32, i32) {
    %c0_i32 = arith.constant 0 : i32
    %c0_i32_0 = arith.constant 0 : i32
    %c0_i32_1 = arith.constant 0 : i32
    return %arg0, %c0_i32, %c0_i32_0 : i32, i32, i32
  }
  func.func @transform_1(%arg0: i32, %arg1: i32, %arg2: memref<12xi32, #tpu.memory_space<smem>>) -> (i32, i32, i32) {
    %c0_i32 = arith.constant 0 : i32
    %c0_i32_0 = arith.constant 0 : i32
    return %arg0, %c0_i32, %arg1 : i32, i32, i32
  }
  func.func @transform_2(%arg0: i32, %arg1: i32, %arg2: memref<12xi32, #tpu.memory_space<smem>>) -> (i32, i32, i32) {
    %c0_i32 = arith.constant 0 : i32
    %c0_i32_0 = arith.constant 0 : i32
    %c0_i32_1 = arith.constant 0 : i32
    return %arg0, %c0_i32, %c0_i32_0 : i32, i32, i32
  }
}

</mosaic_0001>

<bundles_post_ra>
// kernel: tpu_custom_call.1
= control target key start
LH: loop header
LB: loop body
LE: loop exit
PB: predicated region body
PF: predicated region fallthrough
CT: control target
= control target key end

     0   :  { %s1504_s0 = inlined_call_operand.vmem [shape: s32[12], index: 0, kind: input, shape index: {}]   ;;  %s1505_s1 = inlined_call_operand.vmem [shape: f32[6,16,8], index: 1, kind: input, shape index: {}]   ;;  %s1506_s2 = inlined_call_operand.vmem [shape: f32[6,8,16], index: 2, kind: input, shape index: {}]   ;;  %s1507_s3 = inlined_call_operand.hbm [shape: f32[6,8,128], index: 3, kind: output, shape index: {}]  }
   0x1   :  { %s8_s14 = sshll.u32 %s1504_s0, 4  ;;  %s9_s14 = int_to_ptr.vmem [resolvable:$true] %s8_s14 }
   0x2   :  { %s1148_s15 = scalar_lea.vmem %s9_s14, 16  ;;  %p1153_p1 = scmp.lt.s32.totalorder %s9_s14, %s9_s14 }
   0x3   :  { %p1149_p0 = scmp.ne.s32.totalorder %s9_s14, %s1148_s15  ;;  %p1154_p2 = scmp.lt.s32.totalorder %s1148_s15, %s1148_s15 }
   0x5   :  { %p1155_p3 = por %p1154_p2, %p1153_p1 }
   0x7   :  { %p1156_p4 = pnand %p1155_p3, %p1149_p0 }
   0x9   :  { %1159 = shalt.err (!%p1156_p4)  }
   0xa   :  { %s1186_s16 = smov [#allocation5]  }
   0xb   :  { %11 = dma.vmem_to_smem %s9_s14, 16, %s1186_s16, [#allocation4] }
   0xc   :  { %1182 = dma.done.wait [#allocation4], 16 }
   0xd   :  { %1183 = vsyncadd [#allocation4], 4294967280 }
   0xe   :  { %13 = sfence }
   0xf   :  { %v55_v0 = vld [vmem:[%s1506_s2] sm:$0xff]  ;;  %v56_v1 = vld [vmem:[%s1506_s2 + $0x8] sm:$0xff]  ;;  %vm61_vm0 = vcmask 64512   ;;  %v45_v3 = vld [vmem:[%s1505_s1 + $0x10] sm:$0xff] }
  0x10   :  { %v43_v2 = vld [vmem:[%s1505_s1] sm:$0xff]  ;;  %1085 = vmatprep.subr.mxu0 %v55_v0  ;;  %1090 = vmatprep.subr.mxu1 %v56_v1  ;;  %v44_v4 = vld [vmem:[%s1505_s1 + $0x8] sm:$0xff]  ;;  %v46_v5 = vld [vmem:[%s1505_s1 + $0x18] sm:$0xff] }
  0x11   :  { %1086 = vmatpush3.msra.mxu0 %v55_v0  ;;  %1087 = vmatprep.mubr.msk.f32.mxu0 %vm61_vm0, %v43_v2  ;;  %v57_v6 = vld [vmem:[%s1506_s2 + $0x10] sm:$0xff]  ;;  %v58_v7 = vld [vmem:[%s1506_s2 + $0x18] sm:$0xff]  ;;  %v47_v8 = vld [vmem:[%s1505_s1 + $0x20] sm:$0xff] }
  0x12   :  { %1091 = vmatpush3.msra.mxu1 %v56_v1  ;;  %1092 = vmatprep.mubr.msk.f32.mxu1 %vm61_vm0, %v45_v3  ;;  %v49_v9 = vld [vmem:[%s1505_s1 + $0x30] sm:$0xff]  ;;  %v48_v10 = vld [vmem:[%s1505_s1 + $0x28] sm:$0xff]  ;;  %v50_v11 = vld [vmem:[%s1505_s1 + $0x38] sm:$0xff] }
  0x13   :  { %1088 = vmatmul.mubr.msk.f32.vlgmr.msra.gmra.mrb[0].mxu0 %vm61_vm0, %v44_v4  ;;  %1093 = vmatmul.mubr.msk.f32.vlgmr.msra.gmra.mrb[0].mxu1 %vm61_vm0, %v46_v5  ;;  %v59_v12 = vld [vmem:[%s1506_s2 + $0x20] sm:$0xff] }
  0x14   :  { %1095 = vmatprep.subr.mxu0 %v57_v6  ;;  %1100 = vmatprep.subr.mxu1 %v58_v7  ;;  %v51_v13 = vld [vmem:[%s1505_s1 + $0x40] sm:$0xff] }
  0x15   :  { %1096 = vmatpush3.msra.mxu0 %v57_v6  ;;  %1097 = vmatprep.mubr.msk.f32.mxu0 %vm61_vm0, %v47_v8 }
  0x16   :  { %14 = vsyncpa [#allocation7], 0  ;;  %1101 = vmatpush3.msra.mxu1 %v58_v7  ;;  %1102 = vmatprep.mubr.msk.f32.mxu1 %vm61_vm0, %v49_v9  ;;  %v60_v14 = vld [vmem:[%s1506_s2 + $0x28] sm:$0xff]  ;;  %v53_v15 = vld [vmem:[%s1505_s1 + $0x50] sm:$0xff]  ;;  %vm572_vm1 = vcmask 130048   ;;  %v676_v48 = vlaneseq  ;;  %s1292_s2 = sld [smem:[#allocation5 + $0x1]] }
  0x17   :  { %1098 = vmatmul.mubr.msk.f32.vlgmr.msra.gmra.mrb[2].mxu0 %vm61_vm0, %v48_v10  ;;  %1103 = vmatmul.mubr.msk.f32.vlgmr.msra.gmra.mrb[2].mxu1 %vm61_vm0, %v50_v11  ;;  %v52_v16 = vld [vmem:[%s1505_s1 + $0x48] sm:$0xff]  ;;  %v54_v17 = vld [vmem:[%s1505_s1 + $0x58] sm:$0xff]  ;;  %s1290_s1 = sld [smem:[#allocation5 + $0x3]]  ;;  %s1301_s24 = sld [smem:[#allocation5 + $0x7]]  ;;  %vm23_vm2 = vcmask 7168   ;;  %vm688_vm5 = vcmask 122880  }
  0x18   :  { %1105 = vmatprep.subr.mxu0 %v59_v12  ;;  %1107 = vmatprep.mubr.msk.f32.mxu0 %vm61_vm0, %v51_v13  ;;  %s1303_s25 = sld [smem:[#allocation5 + $0x5]]  ;;  %v1187_v13 = vmov 1e+30   ;;  %s1320_s26 = sld [smem:[#allocation5 + $0xb]]  ;;  %vm36_vm10 = vcmask 0  }
  0x19   :  { %1106 = vmatpush3.msra.mxu0 %v59_v12  ;;  %1110 = vmatprep.subr.mxu1 %v60_v14  ;;  %27 = vst.msk [vmem:[#allocation2 + $0x18] sm:$0xff] %vm23_vm2, %v1187_v13  ;;  %24 = vst.msk [vmem:[#allocation2] sm:$0xff] %vm23_vm2, %v1187_v13  ;;  %s1322_s27 = sld [smem:[#allocation5 + $0x9]]  ;;  %s1353_s28 = sld [smem:[#allocation5]] }
  0x1a   :  { %1111 = vmatpush3.msra.mxu1 %v60_v14  ;;  %1112 = vmatprep.mubr.msk.f32.mxu1 %vm61_vm0, %v53_v15  ;;  %25 = vst.msk [vmem:[#allocation2 + $0x8] sm:$0xff] %vm23_vm2, %v1187_v13  ;;  %26 = vst.msk [vmem:[#allocation2 + $0x10] sm:$0xff] %vm23_vm2, %v1187_v13  ;;  %s1358_s29 = sld [smem:[#allocation5 + $0x2]]  ;;  %s1362_s30 = sld [smem:[#allocation5 + $0x4]] }
  0x1b   :  { %1108 = vmatmul.mubr.msk.f32.vlgmr.msra.gmra.mrb[4].mxu0 %vm61_vm0, %v52_v16  ;;  %1113 = vmatmul.mubr.msk.f32.vlgmr.msra.gmra.mrb[4].mxu1 %vm61_vm0, %v54_v17  ;;  %28 = vst.msk [vmem:[#allocation2 + $0x20] sm:$0xff] %vm23_vm2, %v1187_v13  ;;  %29 = vst.msk [vmem:[#allocation2 + $0x28] sm:$0xff] %vm23_vm2, %v1187_v13  ;;  %v677_v16 = vand.u32 127, %v676_v48  ;;  %s1370_s4 = sld [smem:[#allocation5 + $0x6]]  ;;  %s1391_s5 = sld [smem:[#allocation5 + $0x8]] }
  0x1c   :  { %30 = vst.msk [vmem:[#allocation2 + $0x30] sm:$0xff] %vm23_vm2, %v1187_v13  ;;  %31 = vst.msk [vmem:[#allocation2 + $0x38] sm:$0xff] %vm23_vm2, %v1187_v13  ;;  %s1416_s6 = sld [smem:[#allocation5 + $0xa]]  ;;  %s1190_s19 = smov [#allocation6]  }
  0x1d   :  { %32 = vst.msk [vmem:[#allocation2 + $0x40] sm:$0xff] %vm23_vm2, %v1187_v13  ;;  %33 = vst.msk [vmem:[#allocation2 + $0x48] sm:$0xff] %vm23_vm2, %v1187_v13  ;;  %s1033_s20 = sshll.u32 %s1190_s19, 4  ;;  %s1034_s20 = int_to_ptr.vmem [resolvable:$true] %s1033_s20 }
  0x1e   :  { %34 = vst.msk [vmem:[#allocation2 + $0x50] sm:$0xff] %vm23_vm2, %v1187_v13  ;;  %35 = vst.msk [vmem:[#allocation2 + $0x58] sm:$0xff] %vm23_vm2, %v1187_v13  ;;  %s1160_s0 = scalar_lea.vmem %s1034_s20, 768  ;;  %p1165_p6 = scmp.lt.s32.totalorder %s1034_s20, %s1034_s20 }
  0x1f   :  { %p1161_p5 = scmp.ne.s32.totalorder %s1034_s20, %s1160_s0  ;;  %p1166_p7 = scmp.lt.s32.totalorder %s1160_s0, %s1160_s0 }
  0x21   :  { %p1167_p8 = por %p1166_p7, %p1165_p6 }
  0x23   :  { %v567_v13 = vld [vmem:[#allocation2 + $0x38] sm:$0xff]  ;;  %p1168_p9 = pnand %p1167_p8, %p1161_p5 }
  0xe6   :  { %v1089_v18 = vpop.f32.mrb[0].mxu0  ;;  %v1094_v19 = vpop.f32.mrb[0].mxu1 }
  0xe7   :  { %v549_v20 = vmax.f32 %v1089_v18, 0.0  ;;  %v551_v21 = vmax.f32 %v1094_v19, 0.0  ;;  %v134_v22 = vpop.f32.mrb[1].mxu0  ;;  %v215_v23 = vpop.f32.mrb[1].mxu1  ;;  %v710_v19 = vstv %s1290_s1 }
  0xe8   :  { %v548_v24 = vmax.f32 %v134_v22, 0.0  ;;  %v550_v25 = vmax.f32 %v215_v23, 0.0  ;;  %vm1324_vm3 = vcmp.lt.s32.totalorder %v677_v16, %v710_v19 }
  0xe9   :  { %v582_v26 = vsel %vm572_vm1, %v551_v21, inf  ;;  %v576_v27 = vsel %vm572_vm1, %v549_v20, inf  ;;  %v685_v20 = vstv %s1292_s2 }
  0xea   :  { %583 = vmin.xlane.f32.xlu1 %v582_v26  ;;  %v1104_v28 = vpop.f32.mrb[2].mxu1  ;;  %577 = vmin.xlane.f32.xlu0 %v576_v27  ;;  %v1099_v29 = vpop.f32.mrb[2].mxu0  ;;  %v579_v30 = vsel %vm572_vm1, %v550_v25, inf  ;;  %v573_v31 = vsel %vm572_vm1, %v548_v24, inf  ;;  %vm1328_vm4 = vcmp.lt.s32.totalorder %v677_v16, %v685_v20 }
  0xeb   :  { %v555_v32 = vmax.f32 %v1104_v28, 0.0  ;;  %v553_v33 = vmax.f32 %v1099_v29, 0.0  ;;  %v296_v34 = vpop.f32.mrb[3].mxu0  ;;  %v377_v35 = vpop.f32.mrb[3].mxu1  ;;  %v641_v36 = vmin.f32 %v579_v30, %v582_v26  ;;  %v634_v37 = vmin.f32 %v573_v31, %v576_v27 }
  0xec   :  { %v552_v38 = vmax.f32 %v296_v34, 0.0  ;;  %v554_v39 = vmax.f32 %v377_v35, 0.0  ;;  %v732_v34 = vstv %s1303_s25 }
  0xed   :  { %v642_v40 = vrot.slane %v641_v36, 4  ;;  %v635_v41 = vrot.slane %v634_v37, 4  ;;  %v588_v42 = vsel %vm572_vm1, %v553_v33, inf  ;;  %v594_v43 = vsel %vm572_vm1, %v555_v32, inf }
  0xee   :  { %580 = vmin.xlane.f32.xlu1 %v579_v30  ;;  %574 = vmin.xlane.f32.xlu0 %v573_v31  ;;  %v1109_v44 = vpop.f32.mrb[4].mxu0  ;;  %v1114_v45 = vpop.f32.mrb[4].mxu1  ;;  %v585_v46 = vsel %vm572_vm1, %v552_v38, inf  ;;  %v591_v47 = vsel %vm572_vm1, %v554_v39, inf  ;;  %v754_v33 = vstv %s1301_s24  ;;  %vm733_vm7 = vcmp.lt.s32.totalorder %v677_v16, %v732_v34 }
  0xef   :  { %v643_v49 = vmin.f32 %v641_v36, %v642_v40  ;;  %v636_v50 = vmin.f32 %v634_v37, %v635_v41  ;;  %v557_v51 = vmax.f32 %v1109_v44, 0.0  ;;  %v458_v52 = vpop.f32.mrb[5].mxu0  ;;  %v559_v53 = vmax.f32 %v1114_v45, 0.0  ;;  %v539_v54 = vpop.f32.mrb[5].mxu1 }
  0xf0   :  { %v556_v55 = vmax.f32 %v458_v52, 0.0  ;;  %v648_v56 = vmin.f32 %v585_v46, %v588_v42  ;;  %v558_v57 = vmax.f32 %v539_v54, 0.0  ;;  %v655_v58 = vmin.f32 %v591_v47, %v594_v43 }
  0xf1   :  { %v644_v59 = vrot.slane %v643_v49, 2  ;;  %v637_v60 = vrot.slane %v636_v50, 2  ;;  %v600_v61 = vsel %vm572_vm1, %v557_v51, inf  ;;  %v1296_v62 = vsel %vm572_vm1, %v559_v53, inf }
  0xf2   :  { %589 = vmin.xlane.f32.xlu1 %v588_v42  ;;  %586 = vmin.xlane.f32.xlu0 %v585_v46  ;;  %v649_v63 = vrot.slane %v648_v56, 4  ;;  %v656_v0 = vrot.slane %v655_v58, 4  ;;  %v597_v1 = vsel %vm572_vm1, %v556_v55, inf  ;;  %v603_v2 = vsel %vm572_vm1, %v558_v57, inf  ;;  %v563_v57 = vld [vmem:[#allocation2 + $0x18] sm:$0xff] }
  0xf3   :  { %v662_v3 = vmin.f32 %v597_v1, %v600_v61  ;;  %v669_v4 = vmin.f32 %v603_v2, %v1296_v62  ;;  %v645_v5 = vmin.f32 %v643_v49, %v644_v59  ;;  %v638_v6 = vmin.f32 %v636_v50, %v637_v60 }
  0xf4   :  { %v650_v7 = vmin.f32 %v648_v56, %v649_v63  ;;  %v657_v8 = vmin.f32 %v655_v58, %v656_v0  ;;  %vm755_vm6 = vcmp.lt.s32.totalorder %v677_v16, %v754_v33  ;;  %v798_v41 = vstv %s1320_s26  ;;  %v561_v58 = vld [vmem:[#allocation2 + $0x8] sm:$0xff]  ;;  %v562_v0 = vld [vmem:[#allocation2 + $0x10] sm:$0xff] }
  0xf5   :  { %v663_v9 = vrot.slane %v662_v3, 4  ;;  %v670_v10 = vrot.slane %v669_v4, 4  ;;  %v646_v11 = vrot.slane %v645_v5, 1  ;;  %v639_v12 = vrot.slane %v638_v6, 1 }
  0xf6   :  { %v651_v14 = vrot.slane %v650_v7, 2  ;;  %595 = vmin.xlane.f32.xlu1 %v594_v43  ;;  %v658_v15 = vrot.slane %v657_v8, 2  ;;  %592 = vmin.xlane.f32.xlu0 %v591_v47  ;;  %v776_v42 = vstv %s1322_s27  ;;  %vm799_vm8 = vcmp.lt.s32.totalorder %v677_v16, %v798_v41 }
  0xf7   :  { %v664_v17 = vmin.f32 %v662_v3, %v663_v9  ;;  %v671_v18 = vmin.f32 %v669_v4, %v670_v10  ;;  %v647_v25 = vmin.f32 %v645_v5, %v646_v11  ;;  %v640_v26 = vmin.f32 %v638_v6, %v639_v12  ;;  %v565_v6 = vld [vmem:[#allocation2 + $0x28] sm:$0xff] }
  0xf8   :  { %v659_v21 = vmin.f32 %v657_v8, %v658_v15  ;;  %v652_v22 = vmin.f32 %v650_v7, %v651_v14  ;;  %vm777_vm9 = vcmp.lt.s32.totalorder %v677_v16, %v776_v42  ;;  %v1188_v56 = vmov 0.0   ;;  %v564_v7 = vld [vmem:[#allocation2 + $0x20] sm:$0xff]  ;;  %v566_v14 = vld [vmem:[#allocation2 + $0x30] sm:$0xff] }
  0xf9   :  { %v665_v23 = vrot.slane %v664_v17, 2  ;;  %v672_v24 = vrot.slane %v671_v18, 2  ;;  %v712_v35 = vsel %vm1324_vm3, %v647_v25, 0.0  ;;  %v687_v36 = vsel %vm1328_vm4, %v640_v26, 0.0  ;;  %37 = vst.msk [vmem:[#allocation3] sm:$0x1] %vm36_vm10, %v1188_v56 }
  0xfa   :  { %601 = vmin.xlane.f32.xlu1 %v600_v61  ;;  %598 = vmin.xlane.f32.xlu0 %v597_v1  ;;  %v660_v29 = vrot.slane %v659_v21, 1  ;;  %v653_v30 = vrot.slane %v652_v22, 1  ;;  %v713_v43 = vsel %vm688_vm5, %v712_v35, 0.0  ;;  %v689_v44 = vsel %vm688_vm5, %v687_v36, 0.0  ;;  %38 = vst.msk [vmem:[#allocation3 + $0x1] sm:$0x1] %vm36_vm10, %v1188_v56 }
  0xfb   :  { %v673_v31 = vmin.f32 %v671_v18, %v672_v24  ;;  %v666_v32 = vmin.f32 %v664_v17, %v665_v23  ;;  %39 = vst.msk [vmem:[#allocation3 + $0x2] sm:$0x1] %vm36_vm10, %v1188_v56  ;;  %40 = vst.msk [vmem:[#allocation3 + $0x3] sm:$0x1] %vm36_vm10, %v1188_v56  ;;  %v1356_v63 = vshrl.u32 %v676_v48, 7  ;;  %v560_v1 = vld [vmem:[#allocation2] sm:$0xff]  ;;  %v824_v8 = vstv %s1353_s28 }
  0xfc   :  { %v661_v37 = vmin.f32 %v659_v21, %v660_v29  ;;  %v654_v38 = vmin.f32 %v652_v22, %v653_v30  ;;  %41 = vst.msk [vmem:[#allocation3 + $0x4] sm:$0x1] %vm36_vm10, %v1188_v56  ;;  %42 = vst.msk [vmem:[#allocation3 + $0x5] sm:$0x1] %vm36_vm10, %v1188_v56  ;;  %v858_v17 = vstv %s1358_s29  ;;  %v893_v22 = vstv %s1362_s30  ;;  %v569_v25 = vld [vmem:[#allocation2 + $0x48] sm:$0xff]  ;;  %v568_v29 = vld [vmem:[#allocation2 + $0x40] sm:$0xff] }
  0xfd   :  { %v674_v39 = vrot.slane %v673_v31, 1  ;;  %v667_v40 = vrot.slane %v666_v32, 1  ;;  %v1365_v48 = vadd.s32 8, %v1356_v63  ;;  %vm1381_vm12 = vcmp.lt.s32.totalorder %v1356_v63, %v824_v8 }
  0xfe   :  { %607 = vmin.xlane.f32.xlu1 %v1296_v62  ;;  %604 = vmin.xlane.f32.xlu0 %v603_v2  ;;  %v756_v45 = vsel %vm755_vm6, %v661_v37, 0.0  ;;  %v734_v46 = vsel %vm733_vm7, %v654_v38, 0.0  ;;  %vm1386_vm13 = vcmp.lt.s32.totalorder %v1356_v63, %v858_v17  ;;  %vm1407_vm15 = vcmp.lt.s32.totalorder %v1356_v63, %v893_v22 }
  0xff   :  { %v675_v47 = vmin.f32 %v673_v31, %v674_v39  ;;  %v668_v49 = vmin.f32 %v666_v32, %v667_v40  ;;  %v757_v50 = vsel %vm688_vm5, %v756_v45, 0.0  ;;  %v735_v51 = vsel %vm688_vm5, %v734_v46, 0.0  ;;  %v571_v45 = vld [vmem:[#allocation2 + $0x58] sm:$0xff] }
 0x100   :  { %vm1373_vm11 = vcmp.lt.s32.totalorder %v1365_v48, %v824_v8  ;;  %vm1396_vm14 = vcmp.lt.s32.totalorder %v1365_v48, %v858_v17  ;;  %vm1412_vm0 = vcmp.lt.s32.totalorder %v1365_v48, %v893_v22  ;;  %v928_v41 = vstv %s1370_s4 }
 0x101   :  { %v800_v52 = vsel %vm799_vm8, %v675_v47, 0.0  ;;  %v778_v53 = vsel %vm777_vm9, %v668_v49, 0.0  ;;  %v570_v47 = vld [vmem:[#allocation2 + $0x50] sm:$0xff]  ;;  %vm1432_vm1 = vcmp.lt.s32.totalorder %v1356_v63, %v928_v41  ;;  %vm1437_vm3 = vcmp.lt.s32.totalorder %v1365_v48, %v928_v41 }
 0x102   :  { %714 = vadd.xlane.f32.xlu1 %v713_v43  ;;  %690 = vadd.xlane.f32.xlu0 %v689_v44  ;;  %v801_v54 = vsel %vm688_vm5, %v800_v52, 0.0  ;;  %v779_v55 = vsel %vm688_vm5, %v778_v53, 0.0 }
 0x106   :  { %758 = vadd.xlane.f32.xlu1 %v757_v50  ;;  %736 = vadd.xlane.f32.xlu0 %v735_v51 }
 0x10a   :  { %802 = vadd.xlane.f32.xlu1 %v801_v54  ;;  %780 = vadd.xlane.f32.xlu0 %v779_v55 }
 0x177   :  { %v584_v59 = vpop.xlane.xlu1 %583  ;;  %v578_v60 = vpop.xlane.xlu0 %577 }
 0x178   :  { %v612_v61 = vmin.f32 %v563_v57, %v584_v59  ;;  %v610_v62 = vmin.f32 %v561_v58, %v578_v60  ;;  %v963_v59 = vstv %s1391_s5 }
 0x179   :  { %vm1452_vm4 = vcmp.lt.s32.totalorder %v1356_v63, %v963_v59  ;;  %vm1457_vm5 = vcmp.lt.s32.totalorder %v1365_v48, %v963_v59 }
 0x17a   :  { %625 = vst.msk [vmem:[#allocation2 + $0x18] sm:$0xff] %vm23_vm2, %v612_v61  ;;  %623 = vst.msk [vmem:[#allocation2 + $0x8] sm:$0xff] %vm23_vm2, %v610_v62 }
 0x17b   :  { %v581_v2 = vpop.xlane.xlu1 %580  ;;  %v575_v3 = vpop.xlane.xlu0 %574 }
 0x17c   :  { %v611_v4 = vmin.f32 %v562_v0, %v581_v2  ;;  %v609_v5 = vmin.f32 %v560_v1, %v575_v3 }
 0x17e   :  { %624 = vst.msk [vmem:[#allocation2 + $0x10] sm:$0xff] %vm23_vm2, %v611_v4  ;;  %622 = vst.msk [vmem:[#allocation2] sm:$0xff] %vm23_vm2, %v609_v5  ;;  %v998_v5 = vstv %s1416_s6 }
 0x17f   :  { %v590_v9 = vpop.xlane.xlu1 %589  ;;  %v587_v10 = vpop.xlane.xlu0 %586  ;;  %vm1464_vm6 = vcmp.lt.s32.totalorder %v1356_v63, %v998_v5  ;;  %vm1473_vm7 = vcmp.lt.s32.totalorder %v1365_v48, %v998_v5 }
 0x180   :  { %v614_v11 = vmin.f32 %v565_v6, %v590_v9  ;;  %v613_v12 = vmin.f32 %v564_v7, %v587_v10 }
 0x181   :  { %v822_v15 = vld [vmem:[#allocation2 + $0x8] sm:$0xff]  ;;  %v856_v27 = vld [vmem:[#allocation2 + $0x18] sm:$0xff] }
 0x182   :  { %627 = vst.msk [vmem:[#allocation2 + $0x28] sm:$0xff] %vm23_vm2, %v614_v11  ;;  %626 = vst.msk [vmem:[#allocation2 + $0x20] sm:$0xff] %vm23_vm2, %v613_v12  ;;  %v828_v26 = vsel %vm1373_vm11, %v822_v15, 0.0  ;;  %v862_v40 = vsel %vm1396_vm14, %v856_v27, 0.0 }
 0x183   :  { %v596_v18 = vpop.xlane.xlu1 %595  ;;  %v593_v19 = vpop.xlane.xlu0 %592  ;;  %v830_v39 = vsel %vm23_vm2, %v828_v26, 0.0  ;;  %v864_v51 = vsel %vm23_vm2, %v862_v40, 0.0 }
 0x184   :  { %v616_v23 = vmin.f32 %v567_v13, %v596_v18  ;;  %v615_v24 = vmin.f32 %v566_v14, %v593_v19 }
 0x185   :  { %v821_v30 = vld [vmem:[#allocation2] sm:$0xff]  ;;  %v855_v31 = vld [vmem:[#allocation2 + $0x10] sm:$0xff] }
 0x186   :  { %629 = vst.msk [vmem:[#allocation2 + $0x38] sm:$0xff] %vm23_vm2, %v616_v23  ;;  %628 = vst.msk [vmem:[#allocation2 + $0x30] sm:$0xff] %vm23_vm2, %v615_v24  ;;  %v827_v32 = vsel %vm1381_vm12, %v821_v30, 0.0  ;;  %v861_v33 = vsel %vm1386_vm13, %v855_v31, 0.0 }
 0x187   :  { %v602_v36 = vpop.xlane.xlu1 %601  ;;  %v599_v37 = vpop.xlane.xlu0 %598  ;;  %v829_v38 = vsel %vm23_vm2, %v827_v32, 0.0  ;;  %v863_v46 = vsel %vm23_vm2, %v861_v33, 0.0 }
 0x188   :  { %v618_v42 = vmin.f32 %v569_v25, %v602_v36  ;;  %v617_v43 = vmin.f32 %v568_v29, %v599_v37  ;;  %v831_v44 = vadd.f32 %v830_v39, %v829_v38  ;;  %v865_v56 = vadd.f32 %v864_v51, %v863_v46 }
 0x189   :  { %v890_v49 = vld [vmem:[#allocation2 + $0x20] sm:$0xff]  ;;  %v891_v50 = vld [vmem:[#allocation2 + $0x28] sm:$0xff]  ;;  %v1189_v25 = vmov 0  }
 0x18a   :  { %631 = vst.msk [vmem:[#allocation2 + $0x48] sm:$0xff] %vm23_vm2, %v618_v42  ;;  %630 = vst.msk [vmem:[#allocation2 + $0x40] sm:$0xff] %vm23_vm2, %v617_v43  ;;  %832 = vadd.xlane.f32.xlu0 %v831_v44  ;;  %v896_v52 = vsel %vm1407_vm15, %v890_v49, 0.0  ;;  %v897_v53 = vsel %vm1412_vm0, %v891_v50, 0.0  ;;  %1146 = vset.pattern.permute.xlu1 %v1189_v25 }
 0x18b   :  { %v608_v54 = vpop.xlane.xlu1 %607  ;;  %v605_v55 = vpop.xlane.xlu0 %604  ;;  %v898_v62 = vsel %vm23_vm2, %v896_v52, 0.0  ;;  %v899_v0 = vsel %vm23_vm2, %v897_v53, 0.0  ;;  %1147 = vset.pattern.permute.xlu0 %v1189_v25 }
 0x18c   :  { %v620_v60 = vmin.f32 %v571_v45, %v608_v54  ;;  %v619_v61 = vmin.f32 %v570_v47, %v605_v55  ;;  %v900_v8 = vadd.f32 %v899_v0, %v898_v62 }
 0x18d   :  { %v925_v1 = vld [vmem:[#allocation2 + $0x30] sm:$0xff]  ;;  %v926_v2 = vld [vmem:[#allocation2 + $0x38] sm:$0xff] }
 0x18e   :  { %633 = vst.msk [vmem:[#allocation2 + $0x58] sm:$0xff] %vm23_vm2, %v620_v60  ;;  %632 = vst.msk [vmem:[#allocation2 + $0x50] sm:$0xff] %vm23_vm2, %v619_v61  ;;  %866 = vadd.xlane.f32.xlu0 %v865_v56  ;;  %v931_v3 = vsel %vm1432_vm1, %v925_v1, 0.0  ;;  %v932_v4 = vsel %vm1437_vm3, %v926_v2, 0.0 }
 0x18f   :  { %v715_v6 = vpop.xlane.xlu1 %714  ;;  %v691_v7 = vpop.xlane.xlu0 %690  ;;  %v933_v13 = vsel %vm23_vm2, %v931_v3, 0.0  ;;  %v934_v14 = vsel %vm23_vm2, %v932_v4, 0.0 }
 0x190   :  { %v716_v11 = vrot.slane %v715_v6, 4  ;;  %v692_v12 = vrot.slane %v691_v7, 4  ;;  %v935_v24 = vadd.f32 %v934_v14, %v933_v13  ;;  %v753_v14 = vld [vmem:[#allocation3 + $0x3] sm:$0x1] }
 0x191   :  { %v960_v16 = vld [vmem:[#allocation2 + $0x40] sm:$0xff]  ;;  %v961_v17 = vld [vmem:[#allocation2 + $0x48] sm:$0xff] }
 0x192   :  { %v717_v18 = vadd.f32 %v716_v11, %v715_v6  ;;  %v693_v19 = vadd.f32 %v692_v12, %v691_v7  ;;  %901 = vadd.xlane.f32.xlu0 %v900_v8  ;;  %v966_v20 = vsel %vm1452_vm4, %v960_v16, 0.0  ;;  %v967_v21 = vsel %vm1457_vm5, %v961_v17, 0.0  ;;  %v684_v7 = vld [vmem:[#allocation3] sm:$0x1]  ;;  %v709_v8 = vld [vmem:[#allocation3 + $0x1] sm:$0x1] }
 0x193   :  { %v759_v22 = vpop.xlane.xlu1 %758  ;;  %v737_v23 = vpop.xlane.xlu0 %736  ;;  %v968_v26 = vsel %vm23_vm2, %v966_v20, 0.0  ;;  %v969_v27 = vsel %vm23_vm2, %v967_v21, 0.0  ;;  %v731_v12 = vld [vmem:[#allocation3 + $0x2] sm:$0x1]  ;;  %v797_v20 = vld [vmem:[#allocation3 + $0x5] sm:$0x1] }
 0x194   :  { %v718_v28 = vrot.slane %v717_v18, 2  ;;  %v694_v29 = vrot.slane %v693_v19, 2  ;;  %v760_v30 = vrot.slane %v759_v22, 4  ;;  %v738_v31 = vrot.slane %v737_v23, 4 }
 0x195   :  { %v995_v32 = vld [vmem:[#allocation2 + $0x50] sm:$0xff]  ;;  %v996_v33 = vld [vmem:[#allocation2 + $0x58] sm:$0xff]  ;;  %v970_v34 = vadd.f32 %v969_v27, %v968_v26 }
 0x196   :  { %v761_v35 = vadd.f32 %v760_v30, %v759_v22  ;;  %v739_v36 = vadd.f32 %v738_v31, %v737_v23  ;;  %936 = vadd.xlane.f32.xlu0 %v935_v24  ;;  %v1001_v48 = vsel %vm1464_vm6, %v995_v32, 0.0  ;;  %v1002_v37 = vsel %vm1473_vm7, %v996_v33, 0.0 }
 0x197   :  { %v803_v38 = vpop.xlane.xlu1 %802  ;;  %v781_v39 = vpop.xlane.xlu0 %780  ;;  %v1003_v40 = vsel %vm23_vm2, %v1001_v48, 0.0  ;;  %v1004_v41 = vsel %vm23_vm2, %v1002_v37, 0.0  ;;  %v695_v42 = vadd.f32 %v694_v29, %v693_v19  ;;  %v719_v43 = vadd.f32 %v718_v28, %v717_v18  ;;  %v775_v19 = vld [vmem:[#allocation3 + $0x4] sm:$0x1] }
 0x198   :  { %v762_v44 = vrot.slane %v761_v35, 2  ;;  %v740_v45 = vrot.slane %v739_v36, 2  ;;  %v804_v46 = vrot.slane %v803_v38, 4  ;;  %v782_v47 = vrot.slane %v781_v39, 4 }
 0x199   :  { %v1005_v49 = vadd.f32 %v1004_v41, %v1003_v40  ;;  %v696_v50 = vrot.slane %v695_v42, 1  ;;  %v720_v51 = vrot.slane %v719_v43, 1 }
 0x19a   :  { %v805_v52 = vadd.f32 %v804_v46, %v803_v38  ;;  %v783_v53 = vadd.f32 %v782_v47, %v781_v39  ;;  %971 = vadd.xlane.f32.xlu0 %v970_v34  ;;  %v741_v54 = vadd.f32 %v740_v45, %v739_v36  ;;  %v763_v55 = vadd.f32 %v762_v44, %v761_v35 }
 0x19b   :  { %1006 = vadd.xlane.f32.xlu1 %v1005_v49  ;;  %v697_v56 = vadd.f32 %v696_v50, %v695_v42  ;;  %v721_v57 = vadd.f32 %v720_v51, %v719_v43 }
 0x19c   :  { %v806_v58 = vrot.slane %v805_v52, 2  ;;  %v784_v59 = vrot.slane %v783_v53, 2  ;;  %v742_v60 = vrot.slane %v741_v54, 1  ;;  %v764_v61 = vrot.slane %v763_v55, 1 }
 0x19d   :  { %1115 = vpush %v697_v56 }
 0x19e   :  { %1117 = vpush %v721_v57  ;;  %v743_v62 = vadd.f32 %v742_v60, %v741_v54  ;;  %v765_v0 = vadd.f32 %v764_v61, %v763_v55  ;;  %v785_v1 = vadd.f32 %v784_v59, %v783_v53  ;;  %v807_v2 = vadd.f32 %v806_v58, %v805_v52 }
 0x1a0   :  { %1119 = vpush %v743_v62  ;;  %v786_v3 = vrot.slane %v785_v1, 1  ;;  %v808_v4 = vrot.slane %v807_v2, 1 }
 0x1a1   :  { %1121 = vpush %v765_v0 }
 0x1a2   :  { %v787_v5 = vadd.f32 %v786_v3, %v785_v1  ;;  %v809_v6 = vadd.f32 %v808_v4, %v807_v2 }
 0x1a4   :  { %1123 = vpush %v787_v5  ;;  %v846_v5 = vsub.s32 0, %v1356_v63 }
 0x1a5   :  { %1125 = vpush %v809_v6 }
 0x1ce   :  { %s1116_s7 = spop %1115 }
 0x1cf   :  { %v699_v9 = vstv %s1116_s7  ;;  %s1118_s8 = spop %1117 }
 0x1d0   :  { %v700_v10 = vadd.f32 %v699_v9, %v684_v7  ;;  %v723_v11 = vstv %s1118_s8 }
 0x1d1   :  { %v724_v13 = vadd.f32 %v723_v11, %v709_v8  ;;  %s1120_s9 = spop %1119 }
 0x1d2   :  { %702 = vst.msk [vmem:[#allocation3] sm:$0x1] %vm36_vm10, %v700_v10  ;;  %v745_v15 = vstv %s1120_s9  ;;  %s1122_s10 = spop %1121 }
 0x1d3   :  { %725 = vst.msk [vmem:[#allocation3 + $0x1] sm:$0x1] %vm36_vm10, %v724_v13  ;;  %v746_v16 = vadd.f32 %v745_v15, %v731_v12  ;;  %v767_v17 = vstv %s1122_s10 }
 0x1d4   :  { %v768_v18 = vadd.f32 %v767_v17, %v753_v14 }
 0x1d5   :  { %747 = vst.msk [vmem:[#allocation3 + $0x2] sm:$0x1] %vm36_vm10, %v746_v16  ;;  %s1124_s11 = spop %1123 }
 0x1d6   :  { %769 = vst.msk [vmem:[#allocation3 + $0x3] sm:$0x1] %vm36_vm10, %v768_v18  ;;  %v789_v21 = vstv %s1124_s11  ;;  %s1126_s12 = spop %1125 }
 0x1d7   :  { %v790_v22 = vadd.f32 %v789_v21, %v775_v19  ;;  %v811_v23 = vstv %s1126_s12 }
 0x1d8   :  { %v812_v24 = vadd.f32 %v811_v23, %v797_v20 }
 0x1d9   :  { %791 = vst.msk [vmem:[#allocation3 + $0x4] sm:$0x1] %vm36_vm10, %v790_v22  ;;  %v823_v6 = vld [vmem:[#allocation3] sm:$0x1] }
 0x1da   :  { %813 = vst.msk [vmem:[#allocation3 + $0x5] sm:$0x1] %vm36_vm10, %v812_v24  ;;  %v857_v10 = vld [vmem:[#allocation3 + $0x1] sm:$0x1] }
 0x1dc   :  { %v892_v14 = vld [vmem:[#allocation3 + $0x2] sm:$0x1] }
 0x1dd   :  { %v927_v18 = vld [vmem:[#allocation3 + $0x3] sm:$0x1] }
 0x1e0   :  { %v962_v21 = vld [vmem:[#allocation3 + $0x4] sm:$0x1] }
 0x1e1   :  { %v997_v24 = vld [vmem:[#allocation3 + $0x5] sm:$0x1] }
 0x217   :  { %v833_v26 = vpop.xlane.xlu0 %832 }
 0x218   :  { %v834_v27 = vrot.slane %v833_v26, 4 }
 0x21a   :  { %v835_v28 = vadd.f32 %v834_v27, %v833_v26 }
 0x21b   :  { %v867_v29 = vpop.xlane.xlu0 %866 }
 0x21c   :  { %v836_v30 = vrot.slane %v835_v28, 2  ;;  %v868_v31 = vrot.slane %v867_v29, 4 }
 0x21e   :  { %v869_v32 = vadd.f32 %v868_v31, %v867_v29  ;;  %v837_v33 = vadd.f32 %v836_v30, %v835_v28 }
 0x21f   :  { %v902_v34 = vpop.xlane.xlu0 %901 }
 0x220   :  { %v870_v35 = vrot.slane %v869_v32, 2  ;;  %v903_v36 = vrot.slane %v902_v34, 4  ;;  %v838_v48 = vrot.slane %v837_v33, 1 }
 0x222   :  { %v904_v37 = vadd.f32 %v903_v36, %v902_v34  ;;  %v839_v38 = vadd.f32 %v838_v48, %v837_v33  ;;  %v871_v39 = vadd.f32 %v870_v35, %v869_v32 }
 0x223   :  { %v937_v40 = vpop.xlane.xlu0 %936 }
 0x224   :  { %v905_v41 = vrot.slane %v904_v37, 2  ;;  %v938_v42 = vrot.slane %v937_v40, 4  ;;  %1127 = vpush %v839_v38  ;;  %v872_v43 = vrot.slane %v871_v39, 1 }
 0x226   :  { %v939_v44 = vadd.f32 %v938_v42, %v937_v40  ;;  %v873_v45 = vadd.f32 %v872_v43, %v871_v39  ;;  %v906_v46 = vadd.f32 %v905_v41, %v904_v37 }
 0x227   :  { %v972_v47 = vpop.xlane.xlu0 %971 }
 0x228   :  { %v940_v49 = vrot.slane %v939_v44, 2  ;;  %v1007_v50 = vpop.xlane.xlu1 %1006  ;;  %v973_v51 = vrot.slane %v972_v47, 4  ;;  %1129 = vpush %v873_v45  ;;  %v907_v52 = vrot.slane %v906_v46, 1 }
 0x229   :  { %v1008_v53 = vrot.slane %v1007_v50, 4 }
 0x22a   :  { %v974_v54 = vadd.f32 %v973_v51, %v972_v47  ;;  %v908_v55 = vadd.f32 %v907_v52, %v906_v46  ;;  %v941_v56 = vadd.f32 %v940_v49, %v939_v44 }
 0x22b   :  { %v1009_v57 = vadd.f32 %v1008_v53, %v1007_v50 }
 0x22c   :  { %v975_v58 = vrot.slane %v974_v54, 2  ;;  %1131 = vpush %v908_v55  ;;  %v942_v59 = vrot.slane %v941_v56, 1 }
 0x22d   :  { %v1010_v60 = vrot.slane %v1009_v57, 2 }
 0x22e   :  { %v943_v61 = vadd.f32 %v942_v59, %v941_v56  ;;  %v976_v62 = vadd.f32 %v975_v58, %v974_v54 }
 0x22f   :  { %v1011_v0 = vadd.f32 %v1010_v60, %v1009_v57 }
 0x230   :  { %1133 = vpush %v943_v61  ;;  %v977_v1 = vrot.slane %v976_v62, 1 }
 0x231   :  { %v1012_v2 = vrot.slane %v1011_v0, 1 }
 0x232   :  { %v978_v3 = vadd.f32 %v977_v1, %v976_v62 }
 0x233   :  { %v1013_v4 = vadd.f32 %v1012_v2, %v1011_v0 }
 0x234   :  { %1135 = vpush %v978_v3 }
 0x235   :  { %1137 = vpush %v1013_v4 }
 0x255   :  { %s1128_s13 = spop %1127 }
 0x256   :  { %v841_v7 = vstv %s1128_s13 }
 0x257   :  { %v842_v8 = vadd.f32 %v841_v7, %v823_v6 }
 0x259   :  { %v847_v9 = vrot.slane %v842_v8, %v846_v5  ;;  %s1130_s14 = spop %1129 }
 0x25a   :  { %v875_v11 = vstv %s1130_s14 }
 0x25b   :  { %v876_v12 = vadd.f32 %v875_v11, %v857_v10  ;;  %849 = vperm.xlu1 %1146, %v847_v9  }
 0x25d   :  { %v881_v13 = vrot.slane %v876_v12, %v846_v5  ;;  %s1132_s15 = spop %1131 }
 0x25e   :  { %v910_v15 = vstv %s1132_s15 }
 0x25f   :  { %v911_v16 = vadd.f32 %v910_v15, %v892_v14  ;;  %883 = vperm.xlu0 %1147, %v881_v13  }
 0x261   :  { %v916_v17 = vrot.slane %v911_v16, %v846_v5  ;;  %s1134_s16 = spop %1133 }
 0x262   :  { %v945_v19 = vstv %s1134_s16 }
 0x263   :  { %v946_v63 = vadd.f32 %v945_v19, %v927_v18  ;;  %918 = vperm.xlu1 %1146, %v916_v17  }
 0x265   :  { %v951_v20 = vrot.slane %v946_v63, %v846_v5  ;;  %s1136_s17 = spop %1135 }
 0x266   :  { %v980_v22 = vstv %s1136_s17  ;;  %s1138_s18 = spop %1137 }
 0x267   :  { %v981_v23 = vadd.f32 %v980_v22, %v962_v21  ;;  %v1015_v25 = vstv %s1138_s18  ;;  %953 = vperm.xlu0 %1147, %v951_v20  }
 0x268   :  { %v1016_v26 = vadd.f32 %v1015_v25, %v997_v24 }
 0x269   :  { %v986_v27 = vrot.slane %v981_v23, %v846_v5 }
 0x26a   :  { %v1021_v28 = vrot.slane %v1016_v26, %v846_v5 }
 0x26b   :  { %988 = vperm.xlu0 %1147, %v986_v27  }
 0x26c   :  { %1023 = vperm.xlu1 %1146, %v1021_v28  }
 0x2da   :  { %v850_v29 = vpop.permute.xlu1 %849 }
 0x2db   :  { %852 = vst [vmem:[#allocation6] sm:$0xff] %v850_v29 }
 0x2de   :  { %v884_v30 = vpop.permute.xlu0 %883 }
 0x2df   :  { %887 = vst [vmem:[#allocation6 + $0x8] sm:$0xff] %v884_v30 }
 0x2e2   :  { %v919_v31 = vpop.permute.xlu1 %918 }
 0x2e3   :  { %922 = vst [vmem:[#allocation6 + $0x10] sm:$0xff] %v919_v31 }
 0x2e6   :  { %v954_v32 = vpop.permute.xlu0 %953 }
 0x2e7   :  { %957 = vst [vmem:[#allocation6 + $0x18] sm:$0xff] %v954_v32 }
 0x2ea   :  { %v989_v33 = vpop.permute.xlu0 %988 }
 0x2eb   :  { %v1024_v34 = vpop.permute.xlu1 %1023  ;;  %992 = vst [vmem:[#allocation6 + $0x20] sm:$0xff] %v989_v33 }
 0x2ec   :  { %1027 = vst [vmem:[#allocation6 + $0x28] sm:$0xff] %v1024_v34 }
 0x2ed   :  { %1171 = shalt.err (!%p1168_p9)
}
 0x2ee   :  { %s1172_s23 = scalar_lea.hbm %s1507_s3, 768 }
 0x2ef   :  { %p1173_p10 = scmp.ne.s32.totalorder %s1507_s3, %s1172_s23  ;;  %p1176_p11 = scmp.lt.u32.totalorder %s1172_s23, %s1507_s3 }
 0x2f1   :  { %p1178_p12 = pnand %p1176_p11, %p1173_p10 }
 0x2f3   :  { %1181 = shalt.err (!%p1178_p12)
}
 0x2f4   :  { %s1191_s26 = smov 128   ;;  %s1192_s27 = smov 8  }
 0x2f5   :  { %1039 = dma.vmem_to_hbm [thread:$0]  %s1034_s20, 768, %s1507_s3, [#allocation7], %s1191_s26, %s1191_s26, %s1192_s27  }
 0x2f6   :  { %1184 = dma.done.wait [#allocation7], 768  }
 0x2f7   :  { %1185 = vsyncadd [#allocation7], 4294966528 }
 0x2f8   :  { %1043 = vsyncpa [#allocation7], 1 }

</bundles_post_ra>
